<compile_context>
chip_gen: v5e
topology: v5e:2x2
jax: 0.10.0
libtpu: 0.0.40
codegen_flags: <defaults>
</compile_context>

<pallas_src>
import math

import jax
import jax.numpy as jnp
from jax.experimental import pallas as pl
from jax.experimental.pallas import tpu as pltpu

# ----------------------------------------------------------------------------
# Model hyper-parameters (small, deterministic)
# ----------------------------------------------------------------------------
N_WORD = 100                 # vocab size
NV_PAD = 128                 # vocab padded to the 128-lane vreg width
EMB_DIM = 32                 # embedding / channel dim
SENT_LEN = 16                # words per sentence
DOC_LEN = 8                  # sentences per document
BATCH = 2
CONV_K = 3                   # conv window over words (valid padding)
CONV_L = SENT_LEN - CONV_K + 1
HIDDEN = EMB_DIM             # BiMLP hidden size

DOC_WORDS = DOC_LEN * SENT_LEN        # words per document (per grid step)


# ----------------------------------------------------------------------------
# Kernel helpers (traced inline into the single kernel body)
# ----------------------------------------------------------------------------
def _encode_doc(ids, w_wide, bias, iota_v):
    """TextCNN encoder for one document.

    ids    : (DOC_WORDS, 1) int32 word ids.
    w_wide : (NV_PAD, CONV_K*EMB_DIM) f32, tap k occupies lanes [k*E, (k+1)*E)
             and already holds (embedding_table @ conv_w[k]) (folded in the
             wrapper, outside the kernel).
    Returns (DOC_LEN, EMB_DIM) f32 sentence representations.
    """
    # One-hot gather, built once (exact 0/1 in f32 -> matmul is an exact
    # row selection of w_wide).
    oh = (ids == iota_v).astype(jnp.float32)                       # (DW, NV)
    y = jnp.dot(oh, w_wide, preferred_element_type=jnp.float32)    # (DW, K*E)

    # Recombine the K taps: conv[s, l] = sum_k y[s, l+k, k*E:(k+1)*E].
    # Static slices per tap -> valid conv, no cross-sentence contamination.
    y3 = y.reshape(DOC_LEN, SENT_LEN, CONV_K * EMB_DIM)
    conv = y3[:, 0:CONV_L, 0:EMB_DIM]
    for k in range(1, CONV_K):
        conv = conv + y3[:, k:k + CONV_L, k * EMB_DIM:(k + 1) * EMB_DIM]

    conv = jnp.maximum(conv + bias, 0.0)                           # (D, L, E)
    return jnp.max(conv, axis=1)                                   # (D, E)


def _cross_attention(jd_sent, cv_sent, infm, zerom):
    """Masked cross attention + mean pooling for one (jd, cv) pair.

    jd_sent, cv_sent: (DOC_LEN, EMB_DIM); infm, zerom: (DOC_LEN, DOC_LEN).
    The cv-side logits are exactly the transpose of the jd-side logits, so a
    single QK^T serves both directions, and because the cv context is mean
    pooled right after, its PV product collapses to a per-row scalar weight.
    """
    scale = 1.0 / math.sqrt(EMB_DIM)
    inv_d = 1.0 / DOC_LEN

    a = jnp.einsum('de,fe->df', jd_sent, cv_sent,
                   preferred_element_type=jnp.float32) * scale     # (D, D)
    masked = a + infm

    # jd side: softmax over keys f (last axis), weighted sum of cv, mean over d.
    m1 = jnp.max(masked, axis=-1, keepdims=True)
    e1 = jnp.exp(masked - m1)
    s1 = jnp.sum(e1, axis=-1, keepdims=True)
    w_jd = e1 * pl.reciprocal(s1, approx=True) * zerom
    jd_ctx = jnp.dot(w_jd, cv_sent, preferred_element_type=jnp.float32)
    jd_vec = jnp.sum(jd_ctx, axis=0, keepdims=True) * inv_d        # (1, E)

    # cv side: logits = masked^T, so its softmax runs along axis 0 of `masked`
    # and the (transposed-back) zero mask is the same `zerom`.  The weighted
    # sum over jd sentences reduces to a per-row scalar weight.
    m2 = jnp.max(masked, axis=0, keepdims=True)
    e2 = jnp.exp(masked - m2)
    s2 = jnp.sum(e2, axis=0, keepdims=True)
    w_cv = e2 * pl.reciprocal(s2, approx=True) * zerom             # == w_cv^T
    sw = jnp.sum(w_cv, axis=1, keepdims=True)                      # (D, 1)
    cv_vec = jnp.sum(sw * jd_sent, axis=0, keepdims=True) * inv_d  # (1, E)
    return jd_vec, cv_vec


def _match_kernel(jd_ids_ref, cv_ids_ref, jd_w_ref, jd_b_ref, cv_w_ref, cv_b_ref,
                  infm_ref, zerom_ref, w1_ref, b1_ref, w2t_ref, b2_ref,
                  score_ref):
    # One (jd, cv) document pair per grid step; batch axis is "parallel".
    iota_v = jax.lax.broadcasted_iota(jnp.int32, (DOC_WORDS, NV_PAD), 1)

    jd_sent = _encode_doc(jd_ids_ref[...], jd_w_ref[...], jd_b_ref[...], iota_v)
    cv_sent = _encode_doc(cv_ids_ref[...], cv_w_ref[...], cv_b_ref[...], iota_v)
    jd_vec, cv_vec = _cross_attention(jd_sent, cv_sent,
                                      infm_ref[...], zerom_ref[...])

    # BiMLP: one merged matmul on the concatenated [jd; cv] vector, then a
    # VPU lane reduction instead of an N=1 MXU matmul.
    hv = jnp.concatenate([jd_vec, cv_vec], axis=1)                 # (1, 2E)
    h = jnp.maximum(jnp.dot(hv, w1_ref[...],
                            preferred_element_type=jnp.float32) + b1_ref[...],
                    0.0)                                           # (1, H)
    logit = jnp.sum(h * w2t_ref[...], axis=-1, keepdims=True) + b2_ref[...]
    score_ref[...] = jax.nn.sigmoid(logit)                         # (1, 1)


# ----------------------------------------------------------------------------
# pallas_call wrapper
# ----------------------------------------------------------------------------
def _fold_conv_weights(table, conv_w):
    """Pre-fold (embedding_table @ conv_w[k]) per tap, taps side by side on the
    lane axis, vocab rows zero-padded to the 128-lane one-hot width."""
    folded = jnp.concatenate([table @ conv_w[k] for k in range(CONV_K)], axis=1)
    return jnp.zeros((NV_PAD, CONV_K * EMB_DIM), jnp.float32).at[:N_WORD].set(folded)


@jax.jit
def match_model_forward(params, jd_ids, cv_ids, inf_mask, zero_mask):
    B, D, S = jd_ids.shape
    DW = D * S

    # Wrapper-side (XLA) prep: folded conv weights, stacked W1, transposed w2.
    jd_w = _fold_conv_weights(params['emb_jd'], params['jd_conv_w'])
    cv_w = _fold_conv_weights(params['emb_cv'], params['cv_conv_w'])
    w1 = jnp.concatenate([params['w1a'], params['w1b']], axis=0)   # (2E, H)
    w2t = params['w2'].T                                           # (1, H)

    jd3 = jd_ids.reshape(B, DW, 1).astype(jnp.int32)
    cv3 = cv_ids.reshape(B, DW, 1).astype(jnp.int32)

    inputs = (jd3, cv3, jd_w, params['jd_conv_b'], cv_w, params['cv_conv_b'],
              inf_mask, zero_mask, w1, params['b1'], w2t, params['b2'])

    def full(shape):
        return pl.BlockSpec(shape, lambda b, _z=(0,) * len(shape): _z)

    def per_batch(s1, s2):
        return pl.BlockSpec((None, s1, s2), lambda b: (b, 0, 0))

    score = pl.pallas_call(
        _match_kernel,
        out_shape=jax.ShapeDtypeStruct((B, 1, 1), jnp.float32),
        grid=(B,),
        in_specs=[
            per_batch(DW, 1),                         # jd word ids
            per_batch(DW, 1),                         # cv word ids
            full((NV_PAD, CONV_K * EMB_DIM)),         # folded jd conv weights
            full((1, EMB_DIM)),                       # jd conv bias
            full((NV_PAD, CONV_K * EMB_DIM)),         # folded cv conv weights
            full((1, EMB_DIM)),                       # cv conv bias
            per_batch(D, D),                          # -inf mask
            per_batch(D, D),                          # zero mask
            full((2 * EMB_DIM, HIDDEN)),              # stacked W1
            full((1, HIDDEN)),                        # b1
            full((1, HIDDEN)),                        # w2^T
            full((1, 1)),                             # b2
        ],
        out_specs=pl.BlockSpec((None, 1, 1), lambda b: (b, 0, 0)),
        compiler_params=pltpu.CompilerParams(
            dimension_semantics=("parallel",)),       # 2 TCs on v7x
    )(*inputs)
    return score.reshape(B, 1)


# ----------------------------------------------------------------------------
# Parameter init (deterministic, PyTorch-like shapes)
# ----------------------------------------------------------------------------
def init_params(key):
    ks = jax.random.split(key, 10)
    scale_emb = 1.0 / math.sqrt(EMB_DIM)
    scale_conv = 1.0 / math.sqrt(CONV_K * EMB_DIM)
    scale_w1 = 1.0 / math.sqrt(2 * EMB_DIM)
    scale_w2 = 1.0 / math.sqrt(HIDDEN)
    return dict(
        emb_jd=jax.random.normal(ks[0], (N_WORD, EMB_DIM), jnp.float32) * scale_emb,
        emb_cv=jax.random.normal(ks[1], (N_WORD, EMB_DIM), jnp.float32) * scale_emb,
        jd_conv_w=jax.random.normal(ks[2], (CONV_K, EMB_DIM, EMB_DIM), jnp.float32) * scale_conv,
        jd_conv_b=jnp.zeros((1, EMB_DIM), jnp.float32),
        cv_conv_w=jax.random.normal(ks[3], (CONV_K, EMB_DIM, EMB_DIM), jnp.float32) * scale_conv,
        cv_conv_b=jnp.zeros((1, EMB_DIM), jnp.float32),
        w1a=jax.random.normal(ks[4], (EMB_DIM, HIDDEN), jnp.float32) * scale_w1,
        w1b=jax.random.normal(ks[5], (EMB_DIM, HIDDEN), jnp.float32) * scale_w1,
        b1=jnp.zeros((1, HIDDEN), jnp.float32),
        w2=jax.random.normal(ks[6], (HIDDEN, 1), jnp.float32) * scale_w2,
        b2=jnp.zeros((1, 1), jnp.float32),
    )


# ----------------------------------------------------------------------------
# Pure-JAX reference (original, unfused math) for a correctness check
# ----------------------------------------------------------------------------
def reference_forward(params, jd_ids, cv_ids, inf_mask, zero_mask):
    B, D, S = jd_ids.shape
    E = EMB_DIM

    def textcnn(ids, table, w, b):
        emb = jnp.take(table, ids.reshape(B * D, S), axis=0)       # (BD, S, E)
        L = S - CONV_K + 1
        acc = jnp.zeros((B * D, L, E), jnp.float32)
        for k in range(CONV_K):
            acc = acc + jnp.einsum('ble,ef->blf', emb[:, k:k + L, :], w[k])
        acc = jnp.maximum(acc + b, 0.0)
        return jnp.max(acc, axis=1).reshape(B, D, E)

    jd = textcnn(jd_ids, params['emb_jd'], params['jd_conv_w'], params['jd_conv_b'])
    cv = textcnn(cv_ids, params['emb_cv'], params['cv_conv_w'], params['cv_conv_b'])

    scale = 1.0 / math.sqrt(E)

    def masked_softmax(a, infm, zerom):
        a = a + infm
        e = jnp.exp(a - jnp.max(a, axis=-1, keepdims=True))
        return e / jnp.sum(e, axis=-1, keepdims=True) * zerom

    a_jd = jnp.einsum('bde,bfe->bdf', jd, cv) * scale
    w_jd = masked_softmax(a_jd, inf_mask, zero_mask)
    jd_vec = jnp.mean(jnp.einsum('bdf,bfe->bde', w_jd, cv), axis=1)

    a_cv = jnp.einsum('bde,bfe->bdf', cv, jd) * scale
    w_cv = masked_softmax(a_cv, jnp.swapaxes(inf_mask, 1, 2),
                          jnp.swapaxes(zero_mask, 1, 2))
    cv_vec = jnp.mean(jnp.einsum('bdf,bfe->bde', w_cv, jd), axis=1)

    h = jnp.maximum(jd_vec @ params['w1a'] + cv_vec @ params['w1b'] + params['b1'], 0.0)
    return jax.nn.sigmoid(h @ params['w2'] + params['b2'])


# ----------------------------------------------------------------------------
# Example run
# ----------------------------------------------------------------------------
if __name__ == "__main__":
    key = jax.random.PRNGKey(0)
    k_param, k_jd, k_cv = jax.random.split(key, 3)
    params = init_params(k_param)

    jd_ids = jax.random.randint(k_jd, (BATCH, DOC_LEN, SENT_LEN), 0, N_WORD,
                                dtype=jnp.int32)
    cv_ids = jax.random.randint(k_cv, (BATCH, DOC_LEN, SENT_LEN), 0, N_WORD,
                                dtype=jnp.int32)

    # Per-document number of valid (non-padded) sentences -> masks.
    jd_lens = jnp.array([5, 7], dtype=jnp.int32)
    cv_lens = jnp.array([8, 3], dtype=jnp.int32)
    ar = jnp.arange(DOC_LEN)
    jd_valid = (ar[None, :] < jd_lens[:, None]).astype(jnp.float32)   # (B, D)
    cv_valid = (ar[None, :] < cv_lens[:, None]).astype(jnp.float32)   # (B, D)
    pair_valid = jd_valid[:, :, None] * cv_valid[:, None, :]          # (B, D, D)
    inf_mask = (1.0 - pair_valid) * (-1e9)                            # 0 / -1e9
    zero_mask = pair_valid                                            # 1 / 0

    score = match_model_forward(params, jd_ids, cv_ids, inf_mask, zero_mask)
    score = jax.block_until_ready(score)
    assert score.shape == (BATCH, 1)
    assert bool(jnp.all(jnp.isfinite(score)))
    assert bool(jnp.all((score > 0.0) & (score < 1.0)))

    ref = reference_forward(params, jd_ids, cv_ids, inf_mask, zero_mask)
    assert bool(jnp.allclose(score, ref, atol=3e-2)), (score, ref)
    print("KERNEL_OK")
</pallas_src>

<mosaic_0001>
module attributes {stable_mosaic.version = 11 : i64} {
  func.func @_match_kernel(%arg0: i32, %arg1: memref<1x128x1xi32, #tpu.memory_space<vmem>>, %arg2: memref<1x128x1xi32, #tpu.memory_space<vmem>>, %arg3: memref<128x96xf32, #tpu.memory_space<vmem>>, %arg4: memref<1x32xf32, #tpu.memory_space<vmem>>, %arg5: memref<128x96xf32, #tpu.memory_space<vmem>>, %arg6: memref<1x32xf32, #tpu.memory_space<vmem>>, %arg7: memref<1x8x8xf32, #tpu.memory_space<vmem>>, %arg8: memref<1x8x8xf32, #tpu.memory_space<vmem>>, %arg9: memref<64x32xf32, #tpu.memory_space<vmem>>, %arg10: memref<1x32xf32, #tpu.memory_space<vmem>>, %arg11: memref<1x32xf32, #tpu.memory_space<vmem>>, %arg12: memref<1x1xf32, #tpu.memory_space<vmem>>, %arg13: memref<1x1x1xf32, #tpu.memory_space<vmem>>) attributes {dimension_semantics = [#tpu.dimension_semantics<parallel>], iteration_bounds = array<i64: 2>, scalar_prefetch = 0 : i64, scratch_operands = 0 : i64, tpu.core_type = #tpu.core_type<tc>, window_params = [{transform_indices = @transform_0, window_bounds = array<i64: 1, 128, 1>}, {transform_indices = @transform_1, window_bounds = array<i64: 1, 128, 1>}, {pipeline_mode = #tpu.pipeline_mode<synchronous>, transform_indices = @transform_2, window_bounds = array<i64: 128, 96>}, {pipeline_mode = #tpu.pipeline_mode<synchronous>, transform_indices = @transform_3, window_bounds = array<i64: 1, 32>}, {pipeline_mode = #tpu.pipeline_mode<synchronous>, transform_indices = @transform_4, window_bounds = array<i64: 128, 96>}, {pipeline_mode = #tpu.pipeline_mode<synchronous>, transform_indices = @transform_5, window_bounds = array<i64: 1, 32>}, {transform_indices = @transform_6, window_bounds = array<i64: 1, 8, 8>}, {transform_indices = @transform_7, window_bounds = array<i64: 1, 8, 8>}, {pipeline_mode = #tpu.pipeline_mode<synchronous>, transform_indices = @transform_8, window_bounds = array<i64: 64, 32>}, {pipeline_mode = #tpu.pipeline_mode<synchronous>, transform_indices = @transform_9, window_bounds = array<i64: 1, 32>}, {pipeline_mode = #tpu.pipeline_mode<synchronous>, transform_indices = @transform_10, window_bounds = array<i64: 1, 32>}, {pipeline_mode = #tpu.pipeline_mode<synchronous>, transform_indices = @transform_11, window_bounds = array<i64: 1, 1>}, {transform_indices = @transform_12, window_bounds = array<i64: 1, 1, 1>}]} {
    %0 = tpu.iota {dimensions = array<i32: 1>} : vector<128x128xi32>
    %c0 = arith.constant 0 : index
    %c0_0 = arith.constant 0 : index
    %c0_1 = arith.constant 0 : index
    %1 = vector.load %arg1[%c0, %c0_0, %c0_1] : memref<1x128x1xi32, #tpu.memory_space<vmem>>, vector<1x128x1xi32>
    %2 = vector.shape_cast %1 : vector<1x128x1xi32> to vector<128x1xi32>
    %c0_2 = arith.constant 0 : index
    %c0_3 = arith.constant 0 : index
    %3 = vector.load %arg3[%c0_2, %c0_3] : memref<128x96xf32, #tpu.memory_space<vmem>>, vector<128x96xf32>
    %c0_4 = arith.constant 0 : index
    %c0_5 = arith.constant 0 : index
    %4 = vector.load %arg4[%c0_4, %c0_5] : memref<1x32xf32, #tpu.memory_space<vmem>>, vector<1x32xf32>
    %5 = vector.broadcast %2 : vector<128x1xi32> to vector<128x128xi32>
    %6 = arith.cmpi eq, %5, %0 : vector<128x128xi32>
    %7 = arith.extui %6 : vector<128x128xi1> to vector<128x128xi32>
    %8 = arith.sitofp %7 : vector<128x128xi32> to vector<128x128xf32>
    %cst = arith.constant dense<0.000000e+00> : vector<128x96xf32>
    %9 = tpu.matmul %8, %3, %cst {dimension_numbers = #tpu.dot_dimension_numbers<[1], [0], [0], [1], [0, 0, 1, 1], [], []>} : vector<128x128xf32>, vector<128x96xf32>, vector<128x96xf32> -> vector<128x96xf32>
    %10 = vector.shape_cast %9 : vector<128x96xf32> to vector<8x16x96xf32>
    %11 = vector.extract_strided_slice %10 {offsets = [0, 0, 0], sizes = [8, 14, 32], strides = [1, 1, 1]} : vector<8x16x96xf32> to vector<8x14x32xf32>
    %12 = vector.extract_strided_slice %10 {offsets = [0, 1, 32], sizes = [8, 14, 32], strides = [1, 1, 1]} : vector<8x16x96xf32> to vector<8x14x32xf32>
    %13 = arith.addf %11, %12 : vector<8x14x32xf32>
    %14 = vector.extract_strided_slice %10 {offsets = [0, 2, 64], sizes = [8, 14, 32], strides = [1, 1, 1]} : vector<8x16x96xf32> to vector<8x14x32xf32>
    %15 = arith.addf %13, %14 : vector<8x14x32xf32>
    %16 = vector.shape_cast %4 : vector<1x32xf32> to vector<1x1x32xf32>
    %17 = vector.broadcast %16 : vector<1x1x32xf32> to vector<8x14x32xf32>
    %18 = arith.addf %15, %17 : vector<8x14x32xf32>
    %cst_6 = arith.constant 0.000000e+00 : f32
    %19 = vector.broadcast %cst_6 : f32 to vector<8x14x32xf32>
    %20 = arith.maximumf %18, %19 : vector<8x14x32xf32>
    %cst_7 = arith.constant dense<0xFF800000> : vector<8x32xf32>
    %21 = vector.multi_reduction <maximumf>, %20, %cst_7 [1] : vector<8x14x32xf32> to vector<8x32xf32>
    %c0_8 = arith.constant 0 : index
    %c0_9 = arith.constant 0 : index
    %c0_10 = arith.constant 0 : index
    %22 = vector.load %arg2[%c0_8, %c0_9, %c0_10] : memref<1x128x1xi32, #tpu.memory_space<vmem>>, vector<1x128x1xi32>
    %23 = vector.shape_cast %22 : vector<1x128x1xi32> to vector<128x1xi32>
    %c0_11 = arith.constant 0 : index
    %c0_12 = arith.constant 0 : index
    %24 = vector.load %arg5[%c0_11, %c0_12] : memref<128x96xf32, #tpu.memory_space<vmem>>, vector<128x96xf32>
    %c0_13 = arith.constant 0 : index
    %c0_14 = arith.constant 0 : index
    %25 = vector.load %arg6[%c0_13, %c0_14] : memref<1x32xf32, #tpu.memory_space<vmem>>, vector<1x32xf32>
    %26 = vector.broadcast %23 : vector<128x1xi32> to vector<128x128xi32>
    %27 = arith.cmpi eq, %26, %0 : vector<128x128xi32>
    %28 = arith.extui %27 : vector<128x128xi1> to vector<128x128xi32>
    %29 = arith.sitofp %28 : vector<128x128xi32> to vector<128x128xf32>
    %cst_15 = arith.constant dense<0.000000e+00> : vector<128x96xf32>
    %30 = tpu.matmul %29, %24, %cst_15 {dimension_numbers = #tpu.dot_dimension_numbers<[1], [0], [0], [1], [0, 0, 1, 1], [], []>} : vector<128x128xf32>, vector<128x96xf32>, vector<128x96xf32> -> vector<128x96xf32>
    %31 = vector.shape_cast %30 : vector<128x96xf32> to vector<8x16x96xf32>
    %32 = vector.extract_strided_slice %31 {offsets = [0, 0, 0], sizes = [8, 14, 32], strides = [1, 1, 1]} : vector<8x16x96xf32> to vector<8x14x32xf32>
    %33 = vector.extract_strided_slice %31 {offsets = [0, 1, 32], sizes = [8, 14, 32], strides = [1, 1, 1]} : vector<8x16x96xf32> to vector<8x14x32xf32>
    %34 = arith.addf %32, %33 : vector<8x14x32xf32>
    %35 = vector.extract_strided_slice %31 {offsets = [0, 2, 64], sizes = [8, 14, 32], strides = [1, 1, 1]} : vector<8x16x96xf32> to vector<8x14x32xf32>
    %36 = arith.addf %34, %35 : vector<8x14x32xf32>
    %37 = vector.shape_cast %25 : vector<1x32xf32> to vector<1x1x32xf32>
    %38 = vector.broadcast %37 : vector<1x1x32xf32> to vector<8x14x32xf32>
    %39 = arith.addf %36, %38 : vector<8x14x32xf32>
    %cst_16 = arith.constant 0.000000e+00 : f32
    %40 = vector.broadcast %cst_16 : f32 to vector<8x14x32xf32>
    %41 = arith.maximumf %39, %40 : vector<8x14x32xf32>
    %cst_17 = arith.constant dense<0xFF800000> : vector<8x32xf32>
    %42 = vector.multi_reduction <maximumf>, %41, %cst_17 [1] : vector<8x14x32xf32> to vector<8x32xf32>
    %c0_18 = arith.constant 0 : index
    %c0_19 = arith.constant 0 : index
    %c0_20 = arith.constant 0 : index
    %43 = vector.load %arg7[%c0_18, %c0_19, %c0_20] : memref<1x8x8xf32, #tpu.memory_space<vmem>>, vector<1x8x8xf32>
    %44 = vector.shape_cast %43 : vector<1x8x8xf32> to vector<8x8xf32>
    %c0_21 = arith.constant 0 : index
    %c0_22 = arith.constant 0 : index
    %c0_23 = arith.constant 0 : index
    %45 = vector.load %arg8[%c0_21, %c0_22, %c0_23] : memref<1x8x8xf32, #tpu.memory_space<vmem>>, vector<1x8x8xf32>
    %46 = vector.shape_cast %45 : vector<1x8x8xf32> to vector<8x8xf32>
    "tpu.trace_start"() <{level = 10 : i32, message = "de,fe->df"}> : () -> ()
    %cst_24 = arith.constant dense<0.000000e+00> : vector<8x8xf32>
    %47 = tpu.matmul %21, %42, %cst_24 {dimension_numbers = #tpu.dot_dimension_numbers<[1], [1], [0], [0], [0, 0, 1, 0], [], []>} : vector<8x32xf32>, vector<8x32xf32>, vector<8x8xf32> -> vector<8x8xf32>
    "tpu.trace_stop"() : () -> ()
    %cst_25 = arith.constant 0.176776692 : f32
    %48 = vector.broadcast %cst_25 : f32 to vector<8x8xf32>
    %49 = arith.mulf %47, %48 : vector<8x8xf32>
    %50 = arith.addf %49, %44 : vector<8x8xf32>
    %cst_26 = arith.constant dense<0xFF800000> : vector<8xf32>
    %51 = vector.multi_reduction <maximumf>, %50, %cst_26 [1] : vector<8x8xf32> to vector<8xf32>
    %52 = vector.shape_cast %51 : vector<8xf32> to vector<8x1xf32>
    %53 = vector.broadcast %52 : vector<8x1xf32> to vector<8x8xf32>
    %54 = arith.subf %50, %53 : vector<8x8xf32>
    %55 = math.exp %54 : vector<8x8xf32>
    %cst_27 = arith.constant dense<0.000000e+00> : vector<8xf32>
    %56 = vector.multi_reduction <add>, %55, %cst_27 [1] : vector<8x8xf32> to vector<8xf32>
    %57 = vector.shape_cast %56 : vector<8xf32> to vector<8x1xf32>
    %58 = tpu.reciprocal %57 {approx = true} : vector<8x1xf32> -> vector<8x1xf32>
    %59 = vector.broadcast %58 : vector<8x1xf32> to vector<8x8xf32>
    %60 = arith.mulf %55, %59 : vector<8x8xf32>
    %61 = arith.mulf %60, %46 : vector<8x8xf32>
    %cst_28 = arith.constant dense<0.000000e+00> : vector<8x32xf32>
    %62 = tpu.matmul %61, %42, %cst_28 {dimension_numbers = #tpu.dot_dimension_numbers<[1], [0], [0], [1], [0, 0, 1, 1], [], []>} : vector<8x8xf32>, vector<8x32xf32>, vector<8x32xf32> -> vector<8x32xf32>
    %cst_29 = arith.constant dense<0.000000e+00> : vector<32xf32>
    %63 = vector.multi_reduction <add>, %62, %cst_29 [0] : vector<8x32xf32> to vector<32xf32>
    %64 = vector.shape_cast %63 : vector<32xf32> to vector<1x32xf32>
    %cst_30 = arith.constant 1.250000e-01 : f32
    %65 = vector.broadcast %cst_30 : f32 to vector<1x32xf32>
    %66 = arith.mulf %64, %65 : vector<1x32xf32>
    %cst_31 = arith.constant dense<0xFF800000> : vector<8xf32>
    %67 = vector.multi_reduction <maximumf>, %50, %cst_31 [0] : vector<8x8xf32> to vector<8xf32>
    %68 = vector.shape_cast %67 : vector<8xf32> to vector<1x8xf32>
    %69 = vector.broadcast %68 : vector<1x8xf32> to vector<8x8xf32>
    %70 = arith.subf %50, %69 : vector<8x8xf32>
    %71 = math.exp %70 : vector<8x8xf32>
    %cst_32 = arith.constant dense<0.000000e+00> : vector<8xf32>
    %72 = vector.multi_reduction <add>, %71, %cst_32 [0] : vector<8x8xf32> to vector<8xf32>
    %73 = vector.shape_cast %72 : vector<8xf32> to vector<1x8xf32>
    %74 = tpu.reciprocal %73 {approx = true} : vector<1x8xf32> -> vector<1x8xf32>
    %75 = vector.broadcast %74 : vector<1x8xf32> to vector<8x8xf32>
    %76 = arith.mulf %71, %75 : vector<8x8xf32>
    %77 = arith.mulf %76, %46 : vector<8x8xf32>
    %cst_33 = arith.constant dense<0.000000e+00> : vector<8xf32>
    %78 = vector.multi_reduction <add>, %77, %cst_33 [1] : vector<8x8xf32> to vector<8xf32>
    %79 = vector.shape_cast %78 : vector<8xf32> to vector<8x1xf32>
    %80 = vector.broadcast %79 : vector<8x1xf32> to vector<8x32xf32>
    %81 = arith.mulf %80, %21 : vector<8x32xf32>
    %cst_34 = arith.constant dense<0.000000e+00> : vector<32xf32>
    %82 = vector.multi_reduction <add>, %81, %cst_34 [0] : vector<8x32xf32> to vector<32xf32>
    %83 = vector.shape_cast %82 : vector<32xf32> to vector<1x32xf32>
    %cst_35 = arith.constant 1.250000e-01 : f32
    %84 = vector.broadcast %cst_35 : f32 to vector<1x32xf32>
    %85 = arith.mulf %83, %84 : vector<1x32xf32>
    %86 = tpu.concatenate %66, %85 in 1 : vector<1x32xf32>, vector<1x32xf32> -> vector<1x64xf32>
    %c0_36 = arith.constant 0 : index
    %c0_37 = arith.constant 0 : index
    %87 = vector.load %arg9[%c0_36, %c0_37] : memref<64x32xf32, #tpu.memory_space<vmem>>, vector<64x32xf32>
    %cst_38 = arith.constant dense<0.000000e+00> : vector<1x32xf32>
    %88 = tpu.matmul %86, %87, %cst_38 {dimension_numbers = #tpu.dot_dimension_numbers<[1], [0], [0], [1], [0, 0, 1, 1], [], []>} : vector<1x64xf32>, vector<64x32xf32>, vector<1x32xf32> -> vector<1x32xf32>
    %c0_39 = arith.constant 0 : index
    %c0_40 = arith.constant 0 : index
    %89 = vector.load %arg10[%c0_39, %c0_40] : memref<1x32xf32, #tpu.memory_space<vmem>>, vector<1x32xf32>
    %90 = arith.addf %88, %89 : vector<1x32xf32>
    %cst_41 = arith.constant 0.000000e+00 : f32
    %91 = vector.broadcast %cst_41 : f32 to vector<1x32xf32>
    %92 = arith.maximumf %90, %91 : vector<1x32xf32>
    %c0_42 = arith.constant 0 : index
    %c0_43 = arith.constant 0 : index
    %93 = vector.load %arg11[%c0_42, %c0_43] : memref<1x32xf32, #tpu.memory_space<vmem>>, vector<1x32xf32>
    %94 = arith.mulf %92, %93 : vector<1x32xf32>
    %cst_44 = arith.constant dense<0.000000e+00> : vector<1xf32>
    %95 = vector.multi_reduction <add>, %94, %cst_44 [1] : vector<1x32xf32> to vector<1xf32>
    %96 = vector.shape_cast %95 : vector<1xf32> to vector<1x1xf32>
    %c0_45 = arith.constant 0 : index
    %c0_46 = arith.constant 0 : index
    %97 = vector.load %arg12[%c0_45, %c0_46] : memref<1x1xf32, #tpu.memory_space<vmem>>, vector<1x1xf32>
    %98 = arith.addf %96, %97 : vector<1x1xf32>
    %99 = arith.negf %98 : vector<1x1xf32>
    %100 = math.exp %99 : vector<1x1xf32>
    %cst_47 = arith.constant 1.000000e+00 : f32
    %101 = vector.broadcast %cst_47 : f32 to vector<1x1xf32>
    %102 = arith.addf %101, %100 : vector<1x1xf32>
    %103 = arith.divf %101, %102 : vector<1x1xf32>
    %c0_48 = arith.constant 0 : index
    %c0_49 = arith.constant 0 : index
    %c0_50 = arith.constant 0 : index
    %104 = vector.load %arg13[%c0_48, %c0_49, %c0_50] : memref<1x1x1xf32, #tpu.memory_space<vmem>>, vector<1x1x1xf32>
    %105 = vector.shape_cast %104 : vector<1x1x1xf32> to vector<1x1xf32>
    %106 = vector.shape_cast %103 : vector<1x1xf32> to vector<1x1x1xf32>
    tpu.vector_store %arg13[%c0_48, %c0_49, %c0_50], %106 {strides = array<i32>} : memref<1x1x1xf32, #tpu.memory_space<vmem>>, vector<1x1x1xf32>,
    return
  }
  func.func @transform_0(%arg0: i32) -> (i32, i32, i32) {
    %c0_i32 = arith.constant 0 : i32
    %c0_i32_0 = arith.constant 0 : i32
    %c0_i32_1 = arith.constant 0 : i32
    return %arg0, %c0_i32, %c0_i32_0 : i32, i32, i32
  }
  func.func @transform_1(%arg0: i32) -> (i32, i32, i32) {
    %c0_i32 = arith.constant 0 : i32
    %c0_i32_0 = arith.constant 0 : i32
    %c0_i32_1 = arith.constant 0 : i32
    return %arg0, %c0_i32, %c0_i32_0 : i32, i32, i32
  }
  func.func @transform_2(%arg0: i32) -> (i32, i32) {
    %c0_i32 = arith.constant 0 : i32
    %c0_i32_0 = arith.constant 0 : i32
    %c0_i32_1 = arith.constant 0 : i32
    return %c0_i32, %c0_i32_0 : i32, i32
  }
  func.func @transform_3(%arg0: i32) -> (i32, i32) {
    %c0_i32 = arith.constant 0 : i32
    %c0_i32_0 = arith.constant 0 : i32
    %c0_i32_1 = arith.constant 0 : i32
    return %c0_i32, %c0_i32_0 : i32, i32
  }
  func.func @transform_4(%arg0: i32) -> (i32, i32) {
    %c0_i32 = arith.constant 0 : i32
    %c0_i32_0 = arith.constant 0 : i32
    %c0_i32_1 = arith.constant 0 : i32
    return %c0_i32, %c0_i32_0 : i32, i32
  }
  func.func @transform_5(%arg0: i32) -> (i32, i32) {
    %c0_i32 = arith.constant 0 : i32
    %c0_i32_0 = arith.constant 0 : i32
    %c0_i32_1 = arith.constant 0 : i32
    return %c0_i32, %c0_i32_0 : i32, i32
  }
  func.func @transform_6(%arg0: i32) -> (i32, i32, i32) {
    %c0_i32 = arith.constant 0 : i32
    %c0_i32_0 = arith.constant 0 : i32
    %c0_i32_1 = arith.constant 0 : i32
    return %arg0, %c0_i32, %c0_i32_0 : i32, i32, i32
  }
  func.func @transform_7(%arg0: i32) -> (i32, i32, i32) {
    %c0_i32 = arith.constant 0 : i32
    %c0_i32_0 = arith.constant 0 : i32
    %c0_i32_1 = arith.constant 0 : i32
    return %arg0, %c0_i32, %c0_i32_0 : i32, i32, i32
  }
  func.func @transform_8(%arg0: i32) -> (i32, i32) {
    %c0_i32 = arith.constant 0 : i32
    %c0_i32_0 = arith.constant 0 : i32
    %c0_i32_1 = arith.constant 0 : i32
    return %c0_i32, %c0_i32_0 : i32, i32
  }
  func.func @transform_9(%arg0: i32) -> (i32, i32) {
    %c0_i32 = arith.constant 0 : i32
    %c0_i32_0 = arith.constant 0 : i32
    %c0_i32_1 = arith.constant 0 : i32
    return %c0_i32, %c0_i32_0 : i32, i32
  }
  func.func @transform_10(%arg0: i32) -> (i32, i32) {
    %c0_i32 = arith.constant 0 : i32
    %c0_i32_0 = arith.constant 0 : i32
    %c0_i32_1 = arith.constant 0 : i32
    return %c0_i32, %c0_i32_0 : i32, i32
  }
  func.func @transform_11(%arg0: i32) -> (i32, i32) {
    %c0_i32 = arith.constant 0 : i32
    %c0_i32_0 = arith.constant 0 : i32
    %c0_i32_1 = arith.constant 0 : i32
    return %c0_i32, %c0_i32_0 : i32, i32
  }
  func.func @transform_12(%arg0: i32) -> (i32, i32, i32) {
    %c0_i32 = arith.constant 0 : i32
    %c0_i32_0 = arith.constant 0 : i32
    %c0_i32_1 = arith.constant 0 : i32
    return %arg0, %c0_i32, %c0_i32_0 : i32, i32, i32
  }
}

</mosaic_0001>

<bundles_post_ra>
// kernel: match_model_forward.1
= control target key start
LH: loop header
LB: loop body
LE: loop exit
PB: predicated region body
PF: predicated region fallthrough
CT: control target
= control target key end

     0   :  { %s1994_s23 = smov 0   ;;  %s2718_s0 = inlined_call_operand.vmem [shape: s32[2,128,1], index: 0, kind: input, shape index: {}]   ;;  %s2719_s1 = inlined_call_operand.vmem [shape: s32[2,128,1], index: 1, kind: input, shape index: {}]   ;;  %s2720_s2 = inlined_call_operand.vmem [shape: f32[128,96], index: 2, kind: input, shape index: {}]   ;;  %s2721_s3 = inlined_call_operand.vmem [shape: f32[1,32], index: 3, kind: input, shape index: {}]   ;;  %s2722_s4 = inlined_call_operand.vmem [shape: f32[128,96], index: 4, kind: input, shape index: {}]   ;;  %s2723_s5 = inlined_call_operand.vmem [shape: f32[1,32], index: 5, kind: input, shape index: {}]   ;;  %s2724_s6 = inlined_call_operand.vmem [shape: f32[2,8,8], index: 6, kind: input, shape index: {}]   ;;  %s2725_s7 = inlined_call_operand.vmem [shape: f32[2,8,8], index: 7, kind: input, shape index: {}]   ;;  %s2726_s8 = inlined_call_operand.vmem [shape: f32[64,32], index: 8, kind: input, shape index: {}]   ;;  %s2727_s9 = inlined_call_operand.vmem [shape: f32[1,32], index: 9, kind: input, shape index: {}]   ;;  %s2728_s10 = inlined_call_operand.vmem [shape: f32[1,32], index: 10, kind: input, shape index: {}]   ;;  %s2729_s11 = inlined_call_operand.<no memory space> [shape: f32[1,1], index: 11, kind: input, shape index: {}]   ;;  %s2730_s12 = inlined_call_operand.vmem [shape: f32[2,1,1], index: 12, kind: output, shape index: {}]  }
   0x1   :  { %v17_v0 = vstv %s2729_s11 }
   0x2   :  { %18 = vst [vmem:[#allocation2] sm:$0x1] %v17_v0 }
   0x3 LB: > { %s1751_s24 = sadd.s32 4294967295, %s1919_s23   ;;  %p1755_p0 = scmp.ge.s32.totalorder %s1919_s23, 1  ;;  %s1919_s23 = sphi %s1994_s23, %s24_s23  }
   0x4   : > { %p392_p1 = scmp.lt.s32.totalorder %s1919_s23, 3 }
   0x6   : > { %p393_p2 = pnand %p1755_p0, %p392_p1 }
   0x7   : > { %p445_p3 = scmp.lt.s32.totalorder (!%p393_p2), %s1751_s24, 1  ;;  %s1923_s15 = smov (!%p393_p2), 64  }
   0x8   : > { %396 = sbr.rel (%p393_p2) target bundleno = 1416 (0x588), region = 68  ;;  %s1925_s28 = smov (!%p393_p2), 32  }
   0xd   : > { %v1921_v1 = vmov 0   ;;  %s2732_s24 = smov (!%p445_p3, %s1751_s24), 1  ;;  %v499_v23 = vld [vmem:[%s2720_s2 + $0x78] sm:$0xff]  ;;  %v498_v24 = vld [vmem:[%s2720_s2 + $0x70] sm:$0xff]  ;;  %v497_v25 = vld [vmem:[%s2720_s2 + $0x68] sm:$0xff] }
   0xe   : > { %1898 = vset.pattern.permute.xlu2 %v1921_v1  ;;  %1897 = vset.pattern.permute.xlu1 %v1921_v1  ;;  %s1833_s11 = sshll.u32 %s2732_s24, 7  ;;  %v496_v29 = vld [vmem:[%s2720_s2 + $0x60] sm:$0xff]  ;;  %v495_v30 = vld [vmem:[%s2720_s2 + $0x58] sm:$0xff]  ;;  %v2063_v32 = vld [vmem:[%s2722_s4 + $0x70] sm:$0xff]  ;;  %s1760_s19 = sshll.u32 %s2732_s24, 3 }
   0xf   : > { %1896 = vset.pattern.permute.xlu0 %v1921_v1  ;;  %s2008_s27 = scalar_lea.vmem %s2719_s1, %s1833_s11  ;;  %s2013_s30 = scalar_lea.vmem %s2718_s0, %s1833_s11  ;;  %597 = vmatpush.msra.mxu0 %v499_v23  ;;  %v2057_v31 = vld [vmem:[%s2722_s4 + $0x78] sm:$0xff]  ;;  %v494_v36 = vld [vmem:[%s2720_s2 + $0x50] sm:$0xff]  ;;  %v2076_v37 = vld [vmem:[%s2722_s4 + $0x68] sm:$0xff] }
  0x10   : > { %v967_v2 = vld [vmem:[%s2008_s27 + $0x10] sm:$0xff]  ;;  %v469_v3 = vld [vmem:[%s2013_s30 + $0x8] sm:$0xff]  ;;  %v468_v4 = vld [vmem:[%s2013_s30] sm:$0xff]  ;;  %1835 = vmatpush.msra.mxu2 %v499_v23  ;;  %1851 = vmatpush.msra.mxu1 %v2057_v31  ;;  %s458_s22 = scalar_lea.vmem %s2724_s6, %s1760_s19  ;;  %s462_s26 = scalar_lea.vmem %s2725_s7, %s1760_s19 }
  0x11   : > { %1005 = vperm.xlu2 %1898, %v967_v2   ;;  %505 = vperm.xlu1 %1897, %v469_v3   ;;  %v470_v5 = vld [vmem:[%s2013_s30 + $0x10] sm:$0xff]  ;;  %v476_v6 = vld [vmem:[%s2013_s30 + $0x40] sm:$0xff]  ;;  %v966_v7 = vld [vmem:[%s2008_s27 + $0x8] sm:$0xff]  ;;  %s465_s16 = scalar_lea.vmem %s2730_s12, %s2732_s24 }
  0x12   : > { %502 = vperm.xlu0 %1896, %v468_v4   ;;  %v471_v8 = vld [vmem:[%s2013_s30 + $0x18] sm:$0xff]  ;;  %v477_v10 = vld [vmem:[%s2013_s30 + $0x48] sm:$0xff]  ;;  %v969_v11 = vld [vmem:[%s2008_s27 + $0x20] sm:$0xff]  ;;  %598 = vmatpush.msra.mxu0 %v498_v24  ;;  %v466_v4 = vlaneseq }
  0x13   : > { %v968_v9 = vld [vmem:[%s2008_s27 + $0x18] sm:$0xff]  ;;  %v478_v12 = vld [vmem:[%s2013_s30 + $0x50] sm:$0xff]  ;;  %v472_v16 = vld [vmem:[%s2013_s30 + $0x20] sm:$0xff]  ;;  %1836 = vmatpush.msra.mxu2 %v498_v24  ;;  %1852 = vmatpush.msra.mxu3 %v2057_v31 }
  0x14   : > { %v975_v13 = vld [vmem:[%s2008_s27 + $0x50] sm:$0xff]  ;;  %v479_v14 = vld [vmem:[%s2013_s30 + $0x58] sm:$0xff]  ;;  %v977_v17 = vld [vmem:[%s2008_s27 + $0x60] sm:$0xff]  ;;  %599 = vmatpush.msra.mxu0 %v497_v25  ;;  %1853 = vmatpush.msra.mxu1 %v2063_v32 }
  0x15   : > { %v976_v15 = vld [vmem:[%s2008_s27 + $0x58] sm:$0xff]  ;;  %v473_v18 = vld [vmem:[%s2013_s30 + $0x28] sm:$0xff]  ;;  %v474_v20 = vld [vmem:[%s2013_s30 + $0x30] sm:$0xff]  ;;  %1837 = vmatpush.msra.mxu2 %v497_v25  ;;  %1854 = vmatpush.msra.mxu3 %v2063_v32 }
  0x16   : > { %v970_v19 = vld [vmem:[%s2008_s27 + $0x28] sm:$0xff]  ;;  %v971_v21 = vld [vmem:[%s2008_s27 + $0x30] sm:$0xff]  ;;  %v480_v22 = vld [vmem:[%s2013_s30 + $0x60] sm:$0xff]  ;;  %600 = vmatpush.msra.mxu0 %v496_v29  ;;  %1855 = vmatpush.msra.mxu1 %v2076_v37 }
  0x17   : > { %v972_v26 = vld [vmem:[%s2008_s27 + $0x38] sm:$0xff]  ;;  %v481_v27 = vld [vmem:[%s2013_s30 + $0x68] sm:$0xff]  ;;  %v482_v33 = vld [vmem:[%s2013_s30 + $0x70] sm:$0xff]  ;;  %1838 = vmatpush.msra.mxu2 %v496_v29  ;;  %1856 = vmatpush.msra.mxu3 %v2076_v37 }
  0x18   : > { %v978_v28 = vld [vmem:[%s2008_s27 + $0x68] sm:$0xff]  ;;  %v979_v34 = vld [vmem:[%s2008_s27 + $0x70] sm:$0xff]  ;;  %v475_v35 = vld [vmem:[%s2013_s30 + $0x38] sm:$0xff]  ;;  %601 = vmatpush.msra.mxu0 %v495_v30 }
  0x19   : > { %508 = vperm.xlu2 %1898, %v470_v5   ;;  %526 = vperm.xlu1 %1897, %v476_v6   ;;  %v493_v38 = vld [vmem:[%s2720_s2 + $0x48] sm:$0xff]  ;;  %v492_v39 = vld [vmem:[%s2720_s2 + $0x40] sm:$0xff]  ;;  %v491_v41 = vld [vmem:[%s2720_s2 + $0x38] sm:$0xff]  ;;  %v2173_v5 = vand.u32 127, %v466_v4 }
  0x1a   : > { %1002 = vperm.xlu0 %1896, %v966_v7   ;;  %1839 = vmatpush.msra.mxu2 %v495_v30  ;;  %v2089_v40 = vld [vmem:[%s2722_s4 + $0x60] sm:$0xff]  ;;  %v2099_v42 = vld [vmem:[%s2722_s4 + $0x58] sm:$0xff]  ;;  %v490_v46 = vld [vmem:[%s2720_s2 + $0x30] sm:$0xff] }
  0x1b   : > { %602 = vmatpush.msra.mxu0 %v494_v36  ;;  %1857 = vmatpush.msra.mxu1 %v2089_v40  ;;  %v980_v43 = vld [vmem:[%s2008_s27 + $0x78] sm:$0xff]  ;;  %v965_v44 = vld [vmem:[%s2008_s27] sm:$0xff]  ;;  %v2112_v47 = vld [vmem:[%s2722_s4 + $0x50] sm:$0xff] }
  0x1c   : > { %1840 = vmatpush.msra.mxu2 %v494_v36  ;;  %1858 = vmatpush.msra.mxu3 %v2089_v40  ;;  %v973_v45 = vld [vmem:[%s2008_s27 + $0x40] sm:$0xff]  ;;  %v489_v48 = vld [vmem:[%s2720_s2 + $0x28] sm:$0xff]  ;;  %v487_v52 = vld [vmem:[%s2720_s2 + $0x18] sm:$0xff] }
  0x1d   : > { %603 = vmatpush.msra.mxu0 %v493_v38  ;;  %1859 = vmatpush.msra.mxu1 %v2099_v42  ;;  %v990_v49 = vld [vmem:[%s2722_s4 + $0x48] sm:$0xff]  ;;  %v488_v50 = vld [vmem:[%s2720_s2 + $0x20] sm:$0xff]  ;;  %v988_v54 = vld [vmem:[%s2722_s4 + $0x38] sm:$0xff] }
  0x1e   : > { %1841 = vmatpush.msra.mxu2 %v493_v38  ;;  %1860 = vmatpush.msra.mxu3 %v2099_v42  ;;  %v989_v51 = vld [vmem:[%s2722_s4 + $0x40] sm:$0xff]  ;;  %v974_v53 = vld [vmem:[%s2008_s27 + $0x48] sm:$0xff]  ;;  %v483_v55 = vld [vmem:[%s2013_s30 + $0x78] sm:$0xff]  ;;  %s1924_s27 = smov 96  }
  0x1f   : > { %604 = vmatpush.msra.mxu0 %v492_v39  ;;  %1861 = vmatpush.msra.mxu1 %v2112_v47  ;;  %v486_v56 = vld [vmem:[%s2720_s2 + $0x10] sm:$0xff]  ;;  %v485_v58 = vld [vmem:[%s2720_s2 + $0x8] sm:$0xff]  ;;  %v484_v60 = vld [vmem:[%s2720_s2] sm:$0xff] }
  0x20   : > { %1842 = vmatpush.msra.mxu2 %v492_v39  ;;  %1862 = vmatpush.msra.mxu3 %v2112_v47  ;;  %v987_v57 = vld [vmem:[%s2722_s4 + $0x30] sm:$0xff]  ;;  %v986_v59 = vld [vmem:[%s2722_s4 + $0x28] sm:$0xff]  ;;  %v985_v61 = vld [vmem:[%s2722_s4 + $0x20] sm:$0xff] }
  0x21   : > { %511 = vperm.xlu2 %1898, %v471_v8   ;;  %1008 = vperm.xlu1 %1897, %v968_v9   ;;  %v984_v62 = vld [vmem:[%s2722_s4 + $0x18] sm:$0xff]  ;;  %v983_v63 = vld [vmem:[%s2722_s4 + $0x10] sm:$0xff]  ;;  %v982_v0 = vld [vmem:[%s2722_s4 + $0x8] sm:$0xff]  ;;  %v1922_v9 = vmov 1.0  }
  0x22   : > { %529 = vperm.xlu0 %1896, %v477_v10   ;;  %605 = vmatpush.msra.mxu0 %v491_v41  ;;  %v981_v1 = vld [vmem:[%s2722_s4] sm:$0xff] }
  0x23   : > { %1843 = vmatpush.msra.mxu2 %v491_v41  ;;  %1863 = vmatpush.msra.mxu1 %v990_v49 }
  0x24   : > { %606 = vmatpush.msra.mxu0 %v490_v46  ;;  %1864 = vmatpush.msra.mxu3 %v990_v49 }
  0x25   : > { %1844 = vmatpush.msra.mxu2 %v490_v46  ;;  %1865 = vmatpush.msra.mxu1 %v989_v51 }
  0x26   : > { %607 = vmatpush.msra.mxu0 %v489_v48  ;;  %1866 = vmatpush.msra.mxu3 %v989_v51 }
  0x27   : > { %1845 = vmatpush.msra.mxu2 %v489_v48  ;;  %1867 = vmatpush.msra.mxu1 %v988_v54 }
  0x28   : > { %608 = vmatpush.msra.mxu0 %v488_v50  ;;  %1868 = vmatpush.msra.mxu3 %v988_v54 }
  0x29   : > { %1011 = vperm.xlu2 %1898, %v969_v11   ;;  %532 = vperm.xlu1 %1897, %v478_v12  }
  0x2a   : > { %1029 = vperm.xlu0 %1896, %v975_v13   ;;  %609 = vmatpush.msra.mxu0 %v487_v52 }
  0x2b   : > { %1869 = vmatpush.msra.mxu1 %v987_v57  ;;  %1846 = vmatpush.msra.mxu2 %v488_v50 }
  0x2c   : > { %610 = vmatpush.msra.mxu0 %v486_v56  ;;  %1870 = vmatpush.msra.mxu3 %v987_v57 }
  0x2d   : > { %1871 = vmatpush.msra.mxu1 %v986_v59  ;;  %1847 = vmatpush.msra.mxu2 %v487_v52 }
  0x2e   : > { %611 = vmatpush.msra.mxu0 %v485_v58  ;;  %1872 = vmatpush.msra.mxu3 %v986_v59 }
  0x2f   : > { %1873 = vmatpush.msra.mxu1 %v985_v61  ;;  %1848 = vmatpush.msra.mxu2 %v486_v56 }
  0x30   : > { %612 = vmatpush.msra.mxu0 %v484_v60  ;;  %1874 = vmatpush.msra.mxu3 %v985_v61 }
  0x31   : > { %535 = vperm.xlu2 %1898, %v479_v14   ;;  %1032 = vperm.xlu1 %1897, %v976_v15  }
  0x32   : > { %514 = vperm.xlu0 %1896, %v472_v16   ;;  %1094 = vmatpush.msrb.mxu0 %v2057_v31 }
  0x33   : > { %1875 = vmatpush.msra.mxu1 %v984_v62  ;;  %1849 = vmatpush.msra.mxu2 %v485_v58 }
  0x34   : > { %1095 = vmatpush.msrb.mxu0 %v2063_v32  ;;  %1876 = vmatpush.msra.mxu3 %v984_v62 }
  0x35   : > { %1877 = vmatpush.msra.mxu1 %v983_v63  ;;  %1850 = vmatpush.msra.mxu2 %v484_v60 }
  0x36   : > { %1096 = vmatpush.msrb.mxu0 %v2076_v37  ;;  %1878 = vmatpush.msra.mxu3 %v983_v63 }
  0x37   : > { %1879 = vmatpush.msra.mxu1 %v982_v0 }
  0x38   : > { %1097 = vmatpush.msrb.mxu0 %v2089_v40  ;;  %1880 = vmatpush.msra.mxu3 %v982_v0 }
  0x39   : > { %1035 = vperm.xlu2 %1898, %v977_v17   ;;  %517 = vperm.xlu1 %1897, %v473_v18  }
  0x3a   : > { %1014 = vperm.xlu0 %1896, %v970_v19   ;;  %1881 = vmatpush.msra.mxu1 %v981_v1 }
  0x3b   : > { %1098 = vmatpush.msrb.mxu0 %v2099_v42  ;;  %1882 = vmatpush.msra.mxu3 %v981_v1 }
  0x3d   : > { %1099 = vmatpush.msrb.mxu0 %v2112_v47 }
  0x3f   : > { %1100 = vmatpush.msrb.mxu0 %v990_v49 }
  0x41   : > { %520 = vperm.xlu2 %1898, %v474_v20   ;;  %1017 = vperm.xlu1 %1897, %v971_v21  }
  0x42   : > { %538 = vperm.xlu0 %1896, %v480_v22   ;;  %1101 = vmatpush.msrb.mxu0 %v989_v51 }
  0x44   : > { %1102 = vmatpush.msrb.mxu0 %v988_v54 }
  0x46   : > { %1103 = vmatpush.msrb.mxu0 %v987_v57 }
  0x48   : > { %1104 = vmatpush.msrb.mxu0 %v986_v59 }
  0x49   : > { %1020 = vperm.xlu2 %1898, %v972_v26   ;;  %541 = vperm.xlu1 %1897, %v481_v27  }
  0x4a   : > { %1038 = vperm.xlu0 %1896, %v978_v28   ;;  %1105 = vmatpush.msrb.mxu0 %v985_v61 }
  0x4c   : > { %1106 = vmatpush.msrb.mxu0 %v984_v62 }
  0x4e   : > { %1107 = vmatpush.msrb.mxu0 %v983_v63 }
  0x50   : > { %1108 = vmatpush.msrb.mxu0 %v982_v0 }
  0x51   : > { %544 = vperm.xlu2 %1898, %v482_v33   ;;  %1041 = vperm.xlu1 %1897, %v979_v34  }
  0x52   : > { %523 = vperm.xlu0 %1896, %v475_v35   ;;  %1109 = vmatpush.msrb.mxu0 %v981_v1 }
  0x59   : > { %1044 = vperm.xlu2 %1898, %v980_v43   ;;  %999 = vperm.xlu1 %1897, %v965_v44  }
  0x5a   : > { %1023 = vperm.xlu0 %1896, %v973_v45  }
  0x61   : > { %1026 = vperm.xlu1 %1897, %v974_v53  }
  0x62   : > { %547 = vperm.xlu0 %1896, %v483_v55  }
  0x6b   : > { %v1006_v2 = vpop.permute.xlu2 %1005 }
  0x6c   : > { %vm1048_vm5 = vcmp.eq.s32.totalorder %v1006_v2, %v2173_v5 }
  0x73   : > { %v509_v3 = vpop.permute.xlu2 %508 }
  0x74   : > { %vm551_vm4 = vcmp.eq.s32.totalorder %v509_v3, %v2173_v5 }
  0x7b   : > { %v512_v8 = vpop.permute.xlu2 %511 }
  0x7c   : > { %vm552_vm7 = vcmp.eq.s32.totalorder %v512_v8, %v2173_v5 }
  0x83   : > { %v506_v6 = vpop.permute.xlu1 %505  ;;  %v1012_v12 = vpop.permute.xlu2 %1011 }
  0x84   : > { %v503_v7 = vpop.permute.xlu0 %502  ;;  %vm550_vm2 = vcmp.eq.s32.totalorder %v506_v6, %v2173_v5  ;;  %vm1050_vm14 = vcmp.eq.s32.totalorder %v1012_v12, %v2173_v5 }
  0x85   : > { %vm549_vm0 = vcmp.eq.s32.totalorder %v503_v7, %v2173_v5 }
  0x86   : > { %1778 = vmatmul.msk.f32.vlgmr.msra.gmra.mxu0 %vm549_vm0, %v1922_v9 }
  0x8b   : > { %v527_v10 = vpop.permute.xlu1 %526  ;;  %v536_v15 = vpop.permute.xlu2 %535 }
  0x8c   : > { %vm557_vm1 = vcmp.eq.s32.totalorder %v527_v10, %v2173_v5  ;;  %v1003_v11 = vpop.permute.xlu0 %1002  ;;  %vm560_vm12 = vcmp.eq.s32.totalorder %v536_v15, %v2173_v5 }
  0x8d   : > { %vm1047_vm3 = vcmp.eq.s32.totalorder %v1003_v11, %v2173_v5  ;;  %1786 = vmatmul.msk.f32.vlgmr.msra.gmra.mxu2 %vm557_vm1, %v1922_v9 }
  0x8e   : > { %1779 = vmatmul.msk.f32.gmra.mxu0 %vm550_vm2, %v1922_v9  ;;  %1811 = vmatmul.msk.f32.vlgmr.msra.gmra.mxu1 %vm1047_vm3, %v1922_v9 }
  0x93   : > { %v1009_v13 = vpop.permute.xlu1 %1008  ;;  %v1036_v18 = vpop.permute.xlu2 %1035 }
  0x94   : > { %v530_v14 = vpop.permute.xlu0 %529  ;;  %vm1049_vm10 = vcmp.eq.s32.totalorder %v1009_v13, %v2173_v5  ;;  %vm1058_vm1 = vcmp.eq.s32.totalorder %v1036_v18, %v2173_v5 }
  0x95   : > { %vm558_vm6 = vcmp.eq.s32.totalorder %v530_v14, %v2173_v5 }
  0x96   : > { %1780 = vmatmul.msk.f32.gmra.mxu0 %vm551_vm4, %v1922_v9  ;;  %1787 = vmatmul.msk.f32.gmra.mxu2 %vm558_vm6, %v1922_v9 }
  0x97   : > { %1812 = vmatmul.msk.f32.gmra.mxu1 %vm1048_vm5, %v1922_v9 }
  0x9b   : > { %v533_v16 = vpop.permute.xlu1 %532  ;;  %v521_v23 = vpop.permute.xlu2 %520 }
  0x9c   : > { %vm559_vm8 = vcmp.eq.s32.totalorder %v533_v16, %v2173_v5  ;;  %v1030_v17 = vpop.permute.xlu0 %1029  ;;  %vm555_vm3 = vcmp.eq.s32.totalorder %v521_v23, %v2173_v5 }
  0x9d   : > { %vm1056_vm9 = vcmp.eq.s32.totalorder %v1030_v17, %v2173_v5 }
  0x9e   : > { %1781 = vmatmul.msk.f32.gmra.mxu0 %vm552_vm7, %v1922_v9  ;;  %1788 = vmatmul.msk.f32.gmra.mxu2 %vm559_vm8, %v1922_v9 }
  0x9f   : > { %1813 = vmatmul.msk.f32.gmra.mxu1 %vm1049_vm10, %v1922_v9  ;;  %1820 = vmatmul.msk.f32.vlgmr.msra.gmra.mxu3 %vm1056_vm9, %v1922_v9 }
  0xa3   : > { %v1033_v19 = vpop.permute.xlu1 %1032  ;;  %v1021_v26 = vpop.permute.xlu2 %1020 }
  0xa4   : > { %vm1057_vm11 = vcmp.eq.s32.totalorder %v1033_v19, %v2173_v5  ;;  %v515_v20 = vpop.permute.xlu0 %514  ;;  %vm1053_vm7 = vcmp.eq.s32.totalorder %v1021_v26, %v2173_v5 }
  0xa5   : > { %vm553_vm13 = vcmp.eq.s32.totalorder %v515_v20, %v2173_v5 }
  0xa6   : > { %1782 = vmatmul.msk.f32.gmra.mxu0 %vm553_vm13, %v1922_v9  ;;  %1789 = vmatmul.msk.f32.gmra.mxu2 %vm560_vm12, %v1922_v9 }
  0xa7   : > { %1814 = vmatmul.msk.f32.gmra.mxu1 %vm1050_vm14, %v1922_v9  ;;  %1821 = vmatmul.msk.f32.gmra.mxu3 %vm1057_vm11, %v1922_v9 }
  0xab   : > { %v518_v21 = vpop.permute.xlu1 %517  ;;  %v545_v29 = vpop.permute.xlu2 %544 }
  0xac   : > { %vm554_vm15 = vcmp.eq.s32.totalorder %v518_v21, %v2173_v5  ;;  %v1015_v22 = vpop.permute.xlu0 %1014  ;;  %vm563_vm9 = vcmp.eq.s32.totalorder %v545_v29, %v2173_v5 }
  0xad   : > { %vm1051_vm0 = vcmp.eq.s32.totalorder %v1015_v22, %v2173_v5 }
  0xae   : > { %1783 = vmatmul.msk.f32.gmra.mxu0 %vm554_vm15, %v1922_v9 }
  0xaf   : > { %1815 = vmatmul.msk.f32.gmra.mxu1 %vm1051_vm0, %v1922_v9  ;;  %1822 = vmatmul.msk.f32.gmra.mxu3 %vm1058_vm1, %v1922_v9  ;;  %vm678_vm0 = vcmask 1046528   ;;  %vm767_vm1 = vcmask 1045504  }
  0xb3   : > { %v1018_v24 = vpop.permute.xlu1 %1017  ;;  %v1045_v32 = vpop.permute.xlu2 %1044 }
  0xb4   : > { %vm1052_vm2 = vcmp.eq.s32.totalorder %v1018_v24, %v2173_v5  ;;  %v539_v25 = vpop.permute.xlu0 %538  ;;  %vm1061_vm13 = vcmp.eq.s32.totalorder %v1045_v32, %v2173_v5 }
  0xb5   : > { %vm561_vm4 = vcmp.eq.s32.totalorder %v539_v25, %v2173_v5 }
  0xb6   : > { %1784 = vmatmul.msk.f32.gmra.mxu0 %vm555_vm3, %v1922_v9  ;;  %1790 = vmatmul.msk.f32.gmra.mxu2 %vm561_vm4, %v1922_v9  ;;  %vm893_vm3 = vcmask 259072   ;;  %vm1468_vm4 = vcmask 1041409  }
  0xb7   : > { %1816 = vmatmul.msk.f32.gmra.mxu1 %vm1052_vm2, %v1922_v9  ;;  %vm891_vm2 = vcmask 261120  }
  0xbb   : > { %v542_v27 = vpop.permute.xlu1 %541 }
  0xbc   : > { %vm562_vm5 = vcmp.eq.s32.totalorder %v542_v27, %v2173_v5  ;;  %v1039_v28 = vpop.permute.xlu0 %1038 }
  0xbd   : > { %vm1059_vm6 = vcmp.eq.s32.totalorder %v1039_v28, %v2173_v5 }
  0xbe   : > { %1791 = vmatmul.msk.f32.gmra.mxu2 %vm562_vm5, %v1922_v9  ;;  %1823 = vmatmul.msk.f32.gmra.mxu3 %vm1059_vm6, %v1922_v9  ;;  %vm1470_vm5 = vcmask 1042434   ;;  %vm1472_vm6 = vcmask 1043459  }
  0xbf   : > { %1817 = vmatmul.msk.f32.gmra.mxu1 %vm1053_vm7, %v1922_v9  ;;  %vm1474_vm7 = vcmask 1044484  }
  0xc3   : > { %v1042_v30 = vpop.permute.xlu1 %1041 }
  0xc4   : > { %vm1060_vm8 = vcmp.eq.s32.totalorder %v1042_v30, %v2173_v5  ;;  %v524_v31 = vpop.permute.xlu0 %523 }
  0xc5   : > { %vm556_vm10 = vcmp.eq.s32.totalorder %v524_v31, %v2173_v5 }
  0xc6   : > { %1785 = vmatmul.msk.f32.gmra.mxu0 %vm556_vm10, %v1922_v9  ;;  %1792 = vmatmul.msk.f32.gmra.mxu2 %vm563_vm9, %v1922_v9  ;;  %vm1478_vm9 = vcmask 1046534   ;;  %vm1480_vm10 = vcmask 1047559  }
  0xc7   : > { %1824 = vmatmul.msk.f32.gmra.mxu3 %vm1060_vm8, %v1922_v9  ;;  %vm1476_vm8 = vcmask 1045509  }
  0xcb   : > { %v1000_v33 = vpop.permute.xlu1 %999 }
  0xcc   : > { %vm1046_vm11 = vcmp.eq.s32.totalorder %v1000_v33, %v2173_v5  ;;  %v1024_v34 = vpop.permute.xlu0 %1023 }
  0xcd   : > { %vm1054_vm12 = vcmp.eq.s32.totalorder %v1024_v34, %v2173_v5 }
  0xce   : > { %1810 = vmatmul.msk.f32.vlgmr.msrb.gmra.mxu0 %vm1046_vm11, %v1922_v9  ;;  %1818 = vmatmul.msk.f32.gmra.mxu1 %vm1054_vm12, %v1922_v9  ;;  %vm1523_vm11 = vcmask 64512   ;;  %vm1614_vm12 = vcmask 523264  }
  0xcf   : > { %1825 = vmatmul.msk.f32.gmra.mxu3 %vm1061_vm13, %v1922_v9  ;;  %vm1641_vm13 = vcmask 253952  }
  0xd3   : > { %v1027_v35 = vpop.permute.xlu1 %1026 }
  0xd4   : > { %vm1055_vm14 = vcmp.eq.s32.totalorder %v1027_v35, %v2173_v5  ;;  %v548_v36 = vpop.permute.xlu0 %547 }
  0xd5   : > { %vm564_vm15 = vcmp.eq.s32.totalorder %v548_v36, %v2173_v5 }
  0xd6   : > { %1793 = vmatmul.msk.f32.gmra.mxu2 %vm564_vm15, %v1922_v9  ;;  %1819 = vmatmul.msk.f32.gmra.mxu1 %vm1055_vm14, %v1922_v9 }
 0x103   : > { %v2239_v37 = vpop.f32.mrf.mxu0 }
 0x104   : > { %v679_v45 = vrot.slane %v2239_v37, 1  ;;  %v768_v50 = vrot.slane %v2239_v37, 2 }
 0x10b   : > { %v2241_v38 = vpop.f32.mrf.mxu0  ;;  %v2243_v39 = vpop.f32.mrf.mxu1 }
 0x10c   : > { %v769_v40 = vrot.slane %v2241_v38, 2  ;;  %v1176_v41 = vrot.slane %v2243_v39, 1  ;;  %v1264_v42 = vrot.slane %v2243_v39, 2  ;;  %v680_v44 = vrot.slane %v2241_v38, 1 }
 0x10e   : > { %794 = vrot.lane.b32.xlu1 %v769_v40, %s1923_s15  ;;  %1289 = vrot.lane.b32.xlu2 %v1264_v42, %s1923_s15  ;;  %v681_v46 = vsel %vm678_vm0, %v679_v45, %v680_v44  ;;  %v770_v52 = vsel %vm767_vm1, %v768_v50, %v769_v40 }
 0x10f   : > { %1201 = vrot.lane.b32.xlu0 %v1176_v41, %s1924_s27 }
 0x110   : > { %v2255_v43 = vpop.f32.mrf.mxu2 }
 0x111   : > { %v691_v48 = vrot.slane %v2255_v43, 1  ;;  %v780_v4 = vrot.slane %v2255_v43, 2 }
 0x113   : > { %v2284_v60 = vpop.f32.mrf.mxu0 }
 0x114   : > { %v2273_v54 = vpop.f32.mrf.mxu1  ;;  %v771_v8 = vrot.slane %v2284_v60, 2  ;;  %v682_v16 = vrot.slane %v2284_v60, 1 }
 0x115   : > { %v1178_v7 = vrot.slane %v2273_v54, 1  ;;  %v1266_v11 = vrot.slane %v2273_v54, 2 }
 0x116   : > { %703 = vrot.lane.b32.xlu2 %v681_v46, %s1924_s27 }
 0x117   : > { %705 = vrot.lane.b32.xlu0 %v680_v44, %s1924_s27 }
 0x119   : > { %v2262_v47 = vpop.f32.mrf.mxu2 }
 0x11a   : > { %v692_v49 = vrot.slane %v2262_v47, 1  ;;  %v781_v62 = vrot.slane %v2262_v47, 2 }
 0x11b   : > { %v2296_v2 = vpop.f32.mrf.mxu0 }
 0x11c   : > { %v693_v51 = vsel %vm678_vm0, %v691_v48, %v692_v49  ;;  %v2287_v61 = vpop.f32.mrf.mxu1  ;;  %v683_v5 = vrot.slane %v2296_v2, 1  ;;  %v782_v6 = vsel %vm767_vm1, %v780_v4, %v781_v62  ;;  %v772_v9 = vrot.slane %v2296_v2, 2 }
 0x11d   : > { %v1179_v63 = vrot.slane %v2287_v61, 1  ;;  %v1267_v3 = vrot.slane %v2287_v61, 2 }
 0x11e   : > { %719 = vrot.lane.b32.xlu2 %v693_v51, %s1924_s27  ;;  %v773_v13 = vsel %vm767_vm1, %v771_v8, %v772_v9  ;;  %v684_v19 = vsel %vm678_vm0, %v682_v16, %v683_v5 }
 0x11f   : > { %792 = vrot.lane.b32.xlu0 %v770_v52, %s1923_s15  ;;  %v1180_v12 = vsel %vm678_vm0, %v1178_v7, %v1179_v63  ;;  %v1268_v14 = vsel %vm767_vm1, %v1266_v11, %v1267_v3 }
 0x121   : > { %v2316_v15 = vpop.f32.mrf.mxu2 }
 0x122   : > { %v2271_v53 = vpop.f32.mrf.mxu3  ;;  %v694_v26 = vrot.slane %v2316_v15, 1  ;;  %v783_v30 = vrot.slane %v2316_v15, 2 }
 0x123   : > { %v1278_v56 = vrot.slane %v2271_v53, 2  ;;  %v1190_v0 = vrot.slane %v2271_v53, 1  ;;  %v2340_v28 = vpop.f32.mrf.mxu0 }
 0x124   : > { %v2330_v22 = vpop.f32.mrf.mxu1 }
 0x125   : > { %v1269_v36 = vrot.slane %v2330_v22, 2  ;;  %v1181_v50 = vrot.slane %v2330_v22, 1 }
 0x127   : > { %721 = vrot.lane.b32.xlu0 %v692_v49, %s1924_s27  ;;  %v685_v49 = vrot.slane %v2340_v28, 1 }
 0x129   : > { %v2327_v20 = vpop.f32.mrf.mxu2 }
 0x12a   : > { %v2276_v55 = vpop.f32.mrf.mxu3  ;;  %v695_v23 = vrot.slane %v2327_v20, 1  ;;  %v784_v27 = vrot.slane %v2327_v20, 2 }
 0x12b   : > { %v1191_v57 = vrot.slane %v2276_v55, 1  ;;  %v1279_v58 = vrot.slane %v2276_v55, 2  ;;  %v2357_v44 = vpop.f32.mrf.mxu0 }
 0x12c   : > { %v696_v31 = vsel %vm678_vm0, %v694_v26, %v695_v23  ;;  %v2347_v33 = vpop.f32.mrf.mxu1  ;;  %v785_v34 = vsel %vm767_vm1, %v783_v30, %v784_v27  ;;  %v686_v46 = vrot.slane %v2357_v44, 1 }
 0x12d   : > { %1221 = vrot.lane.b32.xlu1 %v1191_v57, %s1924_s27  ;;  %v1280_v59 = vsel %vm767_vm1, %v1278_v56, %v1279_v58  ;;  %v1192_v1 = vsel %vm678_vm0, %v1190_v0, %v1191_v57  ;;  %v1270_v35 = vrot.slane %v2347_v33, 2  ;;  %v1182_v40 = vrot.slane %v2347_v33, 1 }
 0x12e   : > { %1307 = vrot.lane.b32.xlu2 %v1280_v59, %s1923_s15  ;;  %v687_v52 = vsel %vm678_vm0, %v685_v49, %v686_v46  ;;  %v774_v59 = vrot.slane %v2340_v28, 2 }
 0x12f   : > { %1309 = vrot.lane.b32.xlu0 %v1279_v58, %s1923_s15  ;;  %v1271_v45 = vsel %vm767_vm1, %v1269_v36, %v1270_v35  ;;  %v1183_v56 = vsel %vm678_vm0, %v1181_v50, %v1182_v40  ;;  %v775_v58 = vrot.slane %v2357_v44, 2 }
 0x132   : > { %v2308_v10 = vpop.f32.mrf.mxu3 }
 0x133   : > { %v1193_v21 = vrot.slane %v2308_v10, 1  ;;  %v1281_v29 = vrot.slane %v2308_v10, 2 }
 0x135   : > { %810 = vrot.lane.b32.xlu1 %v781_v62, %s1923_s15 }
 0x136   : > { %1205 = vrot.lane.b32.xlu2 %v1179_v63, %s1924_s27  ;;  %v776_v63 = vsel %vm767_vm1, %v774_v59, %v775_v58 }
 0x137   : > { %1219 = vrot.lane.b32.xlu0 %v1192_v1, %s1924_s27 }
 0x139   : > { %v2372_v57 = vpop.f32.mrf.mxu2 }
 0x13d   : > { %1293 = vrot.lane.b32.xlu1 %v1267_v3, %s1923_s15  ;;  %v2384_v3 = vpop.f32.mrf.mxu1 }
 0x13e   : > { %709 = vrot.lane.b32.xlu2 %v683_v5, %s1924_s27 }
 0x13f   : > { %808 = vrot.lane.b32.xlu0 %v782_v6, %s1923_s15 }
 0x141   : > { %v2320_v17 = vpop.f32.mrf.mxu3  ;;  %v2386_v4 = vpop.f32.mrf.mxu2 }
 0x142   : > { %v1194_v18 = vrot.slane %v2320_v17, 1  ;;  %v1282_v25 = vrot.slane %v2320_v17, 2  ;;  %v698_v6 = vrot.slane %v2386_v4, 1 }
 0x144   : > { %v1195_v24 = vsel %vm678_vm0, %v1193_v21, %v1194_v18  ;;  %v1283_v32 = vsel %vm767_vm1, %v1281_v29, %v1282_v25 }
 0x145   : > { %1203 = vrot.lane.b32.xlu1 %v1180_v12, %s1924_s27 }
 0x146   : > { %796 = vrot.lane.b32.xlu2 %v773_v13, %s1923_s15  ;;  %v697_v13 = vrot.slane %v2372_v57, 1 }
 0x147   : > { %1291 = vrot.lane.b32.xlu0 %v1268_v14, %s1923_s15  ;;  %v2400_v14 = vpop.f32.mrf.mxu1 }
 0x148   : > { %v699_v21 = vsel %vm678_vm0, %v697_v13, %v698_v6 }
 0x14a   : > { %v2364_v48 = vpop.f32.mrf.mxu3 }
 0x14b   : > { %v1196_v7 = vrot.slane %v2364_v48, 1 }
 0x14d   : > { %707 = vrot.lane.b32.xlu1 %v684_v19, %s1924_s27 }
 0x14e   : > { %1225 = vrot.lane.b32.xlu2 %v1194_v18, %s1924_s27  ;;  %v1284_v18 = vrot.slane %v2364_v48, 2 }
 0x14f   : > { %798 = vrot.lane.b32.xlu0 %v772_v9, %s1923_s15  ;;  %v2395_v9 = vpop.f32.mrf.mxu0 }
 0x152   : > { %v2377_v62 = vpop.f32.mrf.mxu3 }
 0x153   : > { %v1285_v0 = vrot.slane %v2377_v62, 2  ;;  %v1197_v5 = vrot.slane %v2377_v62, 1 }
 0x155   : > { %1223 = vrot.lane.b32.xlu1 %v1195_v24, %s1924_s27  ;;  %v1198_v8 = vsel %vm678_vm0, %v1196_v7, %v1197_v5  ;;  %v1286_v24 = vsel %vm767_vm1, %v1284_v18, %v1285_v0 }
 0x156   : > { %725 = vrot.lane.b32.xlu2 %v695_v23, %s1924_s27  ;;  %v1185_v23 = vrot.slane %v2400_v14, 1 }
 0x157   : > { %1313 = vrot.lane.b32.xlu0 %v1282_v25, %s1923_s15  ;;  %v2412_v25 = vpop.f32.mrf.mxu0 }
 0x158   : > { %v689_v49 = vrot.slane %v2412_v25, 1 }
 0x15d   : > { %723 = vrot.lane.b32.xlu1 %v696_v31, %s1924_s27  ;;  %v1184_v31 = vrot.slane %v2384_v3, 1 }
 0x15e   : > { %1311 = vrot.lane.b32.xlu2 %v1283_v32, %s1923_s15  ;;  %v778_v32 = vrot.slane %v2412_v25, 2 }
 0x15f   : > { %812 = vrot.lane.b32.xlu0 %v785_v34, %s1923_s15 }
 0x165   : > { %1209 = vrot.lane.b32.xlu1 %v1182_v40, %s1924_s27  ;;  %v1273_v40 = vrot.slane %v2400_v14, 2 }
 0x166   : > { %1295 = vrot.lane.b32.xlu2 %v1271_v45, %s1923_s15  ;;  %v2425_v45 = vpop.f32.mrf.mxu2 }
 0x167   : > { %1297 = vrot.lane.b32.xlu0 %v1270_v35, %s1923_s15  ;;  %v2422_v35 = vld [vmem:[%s2721_s3] ss:$0 sm:$0xff] }
 0x168   : > { %v1290_v51 = vpop.permute.xlu2 %1289 }
 0x16d   : > { %711 = vrot.lane.b32.xlu1 %v687_v52, %s1924_s27 }
 0x16e   : > { %713 = vrot.lane.b32.xlu2 %v686_v46, %s1924_s27  ;;  %v2427_v46 = vpop.f32.mrf.mxu1 }
 0x16f   : > { %1207 = vrot.lane.b32.xlu0 %v1183_v56, %s1924_s27 }
 0x170   : > { %v704_v1 = vpop.permute.xlu2 %703 }
 0x171   : > { %v751_v50 = vadd.f32 %v704_v1, %v2239_v37 }
 0x175   : > { %800 = vrot.lane.b32.xlu1 %v776_v63, %s1923_s15  ;;  %v1272_v63 = vrot.slane %v2384_v3, 2 }
 0x176   : > { %802 = vrot.lane.b32.xlu2 %v775_v58, %s1923_s15  ;;  %v688_v58 = vrot.slane %v2395_v9, 1  ;;  %v2447_v13 = vpop.f32.mrf.mxu1 }
 0x177   : > { %1317 = vrot.lane.b32.xlu0 %v1285_v0, %s1923_s15  ;;  %v777_v0 = vrot.slane %v2395_v9, 2  ;;  %v1274_v37 = vsel %vm767_vm1, %v1272_v63, %v1273_v40  ;;  %v2471_v63 = vpop.f32.mrf.mxu0 }
 0x178   : > { %v2397_v11 = vpop.permute.xlu2 %719  ;;  %v690_v7 = vsel %vm678_vm0, %v688_v58, %v689_v49 }
 0x17d   : > { %1229 = vrot.lane.b32.xlu1 %v1197_v5, %s1924_s27 }
 0x17e   : > { %729 = vrot.lane.b32.xlu2 %v698_v6, %s1924_s27 }
 0x17f   : > { %1227 = vrot.lane.b32.xlu0 %v1198_v8, %s1924_s27  ;;  %v2441_v8 = vpop.f32.mrf.mxu2 }
 0x180   : > { %v795_v34 = vpop.permute.xlu1 %794 }
 0x181   : > { %v1202_v12 = vpop.permute.xlu0 %1201 }
 0x182   : > { %v1248_v16 = vadd.f32 %v1202_v12, %v2243_v39  ;;  %v779_v12 = vsel %vm767_vm1, %v777_v0, %v778_v32 }
 0x184   : > { %v2404_v19 = vadd.f32 %v1290_v51, %v1248_v16  ;;  %v701_v16 = vrot.slane %v2441_v8, 1 }
 0x185   : > { %727 = vrot.lane.b32.xlu1 %v699_v21, %s1924_s27 }
 0x186   : > { %1315 = vrot.lane.b32.xlu2 %v1286_v24, %s1923_s15 }
 0x187   : > { %1213 = vrot.lane.b32.xlu0 %v1185_v23, %s1924_s27 }
 0x188   : > { %v2414_v26 = vpop.permute.xlu2 %1307 }
 0x189   : > { %v706_v29 = vpop.permute.xlu0 %705 }
 0x18a   : > { %v752_v30 = vadd.f32 %v706_v29, %v2241_v38  ;;  %v1186_v38 = vsel %vm678_vm0, %v1184_v31, %v1185_v23  ;;  %v1188_v31 = vrot.slane %v2447_v13, 1 }
 0x18c   : > { %v841_v36 = vadd.f32 %v795_v34, %v752_v30  ;;  %v700_v30 = vrot.slane %v2425_v45, 1 }
 0x18d   : > { %806 = vrot.lane.b32.xlu1 %v778_v32, %s1923_s15  ;;  %v1187_v32 = vrot.slane %v2427_v46, 1 }
 0x18e   : > { %1211 = vrot.lane.b32.xlu2 %v1186_v38, %s1924_s27  ;;  %v860_v51 = vadd.f32 %v2422_v35, %v841_v36  ;;  %v702_v34 = vsel %vm678_vm0, %v700_v30, %v701_v16 }
 0x18f   : > { %1301 = vrot.lane.b32.xlu0 %v1273_v40, %s1923_s15  ;;  %v1189_v36 = vsel %vm678_vm0, %v1187_v32, %v1188_v31  ;;  %v1263_v32 = vrot.slane %v2471_v63, 2 }
 0x190   : > { %v1206_v52 = vpop.permute.xlu2 %1205  ;;  %v876_v5 = vmax.f32 %v860_v51, 0.0 }
 0x191   : > { %v793_v56 = vpop.permute.xlu0 %792 }
 0x192   : > { %v840_v59 = vadd.f32 %v793_v56, %v751_v50  ;;  %v894_v18 = vsel %vm893_vm3, %v876_v5, -inf  ;;  %v1276_v56 = vrot.slane %v2447_v13, 2 }
 0x194   : > { %v859_v6 = vadd.f32 %v2422_v35, %v840_v59  ;;  %v1275_v59 = vrot.slane %v2427_v46, 2 }
 0x195   : > { %715 = vrot.lane.b32.xlu1 %v690_v7, %s1924_s27 }
 0x196   : > { %v875_v1 = vmax.f32 %v859_v6, 0.0  ;;  %1299 = vrot.lane.b32.xlu2 %v1274_v37, %s1923_s15  ;;  %v1277_v0 = vsel %vm767_vm1, %v1275_v59, %v1276_v56  ;;  %v1175_v37 = vrot.slane %v2471_v63, 1 }
 0x197   : > { %804 = vrot.lane.b32.xlu0 %v779_v12, %s1923_s15 }
 0x198   : > { %v892_v21 = vsel %vm891_vm2, %v875_v1, -inf  ;;  %v2453_v23 = vpop.permute.xlu2 %709 }
 0x199   : > { %v2455_v24 = vmax.f32 %v892_v21, %v894_v18  ;;  %v722_v29 = vpop.permute.xlu0 %721  ;;  %v787_v18 = vrot.slane %v2386_v4, 2  ;;  %v1177_v21 = vsel %vm678_vm0, %v1175_v37, %v1176_v41  ;;  %vm1666_vm0 = vcmask 0  }
 0x19d   : > { %731 = vrot.lane.b32.xlu1 %v702_v34, %s1924_s27 }
 0x19e   : > { %717 = vrot.lane.b32.xlu2 %v689_v49, %s1924_s27  ;;  %v760_v49 = vadd.f32 %v722_v29, %v2262_v47  ;;  %v1250_v29 = vadd.f32 %v1206_v52, %v2287_v61 }
 0x19f   : > { %v1222_v40 = vpop.permute.xlu1 %1221  ;;  %1215 = vrot.lane.b32.xlu0 %v1189_v36, %s1924_s27 }
 0x1a0   : > { %v1258_v38 = vadd.f32 %v1222_v40, %v2276_v55  ;;  %v2466_v50 = vpop.permute.xlu2 %796  ;;  %v2480_v55 = vld [vmem:[%s2723_s5] ss:$0 sm:$0xff] }
 0x1a1   : > { %v1310_v51 = vpop.permute.xlu0 %1309 }
 0x1a2   : > { %v1346_v58 = vadd.f32 %v1310_v51, %v1258_v38 }
 0x1a4   : > { %v1365_v47 = vadd.f32 %v2480_v55, %v1346_v58 }
 0x1a5   : > { %1217 = vrot.lane.b32.xlu1 %v1188_v31, %s1924_s27 }
 0x1a6   : > { %733 = vrot.lane.b32.xlu2 %v701_v16, %s1924_s27  ;;  %v1381_v30 = vmax.f32 %v1365_v47, 0.0 }
 0x1a7   : > { %v811_v5 = vpop.permute.xlu1 %810  ;;  %1303 = vrot.lane.b32.xlu0 %v1277_v0, %s1923_s15 }
 0x1a8   : > { %v849_v6 = vadd.f32 %v811_v5, %v760_v49  ;;  %v2482_v7 = vpop.permute.xlu2 %1225  ;;  %v1432_v52 = vsel %vm893_vm3, %v1381_v30, -inf }
 0x1a9   : > { %v1220_v1 = vpop.permute.xlu0 %1219 }
 0x1aa   : > { %v1257_v12 = vadd.f32 %v1220_v1, %v2271_v53  ;;  %v868_v34 = vadd.f32 %v2422_v35, %v849_v6 }
 0x1ac   : > { %v1345_v16 = vadd.f32 %v2414_v26, %v1257_v12  ;;  %v759_v26 = vadd.f32 %v2397_v11, %v2255_v43  ;;  %v884_v59 = vmax.f32 %v868_v34, 0.0  ;;  %v1265_v43 = vsel %vm767_vm1, %v1263_v32, %v1264_v42 }
 0x1ad   : > { %1305 = vrot.lane.b32.xlu1 %v1276_v56, %s1923_s15  ;;  %v786_v56 = vrot.slane %v2372_v57, 2 }
 0x1ae   : > { %v1364_v31 = vadd.f32 %v2480_v55, %v1345_v16  ;;  %1199 = vrot.lane.b32.xlu2 %v1177_v21, %s1924_s27  ;;  %v930_v6 = vsel %vm893_vm3, %v884_v59, -inf  ;;  %v790_v21 = vrot.slane %v2441_v8, 2 }
 0x1af   : > { %v1294_v53 = vpop.permute.xlu1 %1293  ;;  %818 = vrot.lane.b32.xlu0 %v787_v18, %s1923_s15  ;;  %v788_v11 = vsel %vm767_vm1, %v786_v56, %v787_v18 }
 0x1b0   : > { %v1380_v36 = vmax.f32 %v1364_v31, 0.0  ;;  %v1338_v40 = vadd.f32 %v1294_v53, %v1250_v29  ;;  %v2501_v41 = vpop.permute.xlu2 %725 }
 0x1b1   : > { %v809_v61 = vpop.permute.xlu0 %808 }
 0x1b2   : > { %v1431_v38 = vsel %vm891_vm2, %v1380_v36, -inf  ;;  %v848_v51 = vadd.f32 %v809_v61, %v759_v26  ;;  %v1357_v37 = vadd.f32 %v2480_v55, %v1338_v40  ;;  %v896_v36 = vrot.slane %v2455_v24, 4 }
 0x1b3   : > { %v2506_v58 = vmax.f32 %v1431_v38, %v1432_v52 }
 0x1b4   : > { %v867_v49 = vadd.f32 %v2422_v35, %v848_v51  ;;  %v1373_v18 = vmax.f32 %v1357_v37, 0.0  ;;  %v897_v56 = vmax.f32 %v2455_v24, %v896_v36 }
 0x1b5   : > { %1287 = vrot.lane.b32.xlu1 %v1265_v43, %s1923_s15  ;;  %v1260_v43 = vadd.f32 %v2482_v7, %v2320_v17 }
 0x1b6   : > { %v883_v0 = vmax.f32 %v867_v49, 0.0  ;;  %816 = vrot.lane.b32.xlu2 %v788_v11, %s1923_s15  ;;  %v1396_v32 = vsel %vm893_vm3, %v1373_v18, -inf }
 0x1b7   : > { %v1204_v5 = vpop.permute.xlu1 %1203 }
 0x1b8   : > { %v929_v1 = vsel %vm891_vm2, %v883_v0, -inf  ;;  %v1249_v47 = vadd.f32 %v1204_v5, %v2273_v54  ;;  %v1312_v12 = vpop.permute.xlu2 %1311  ;;  %v754_v54 = vadd.f32 %v2453_v23, %v2296_v2 }
 0x1b9   : > { %v2519_v39 = vmax.f32 %v929_v1, %v930_v6  ;;  %v1292_v42 = vpop.permute.xlu0 %1291  ;;  %v898_v6 = vrot.slane %v897_v56, 2 }
 0x1ba   : > { %v1337_v16 = vadd.f32 %v1292_v42, %v1249_v47 }
 0x1bb   : > { %v899_v18 = vmax.f32 %v897_v56, %v898_v6 }
 0x1bc   : > { %v1356_v29 = vadd.f32 %v2480_v55, %v1337_v16 }
 0x1bd   : > { %814 = vrot.lane.b32.xlu1 %v784_v27, %s1923_s15  ;;  %v789_v27 = vrot.slane %v2425_v45, 2 }
 0x1be   : > { %v1372_v30 = vmax.f32 %v1356_v29, 0.0  ;;  %822 = vrot.lane.b32.xlu2 %v790_v21, %s1923_s15 }
 0x1bf   : > { %v708_v31 = vpop.permute.xlu1 %707  ;;  %v791_v23 = vsel %vm767_vm1, %v789_v27, %v790_v21 }
 0x1c0   : > { %v1395_v53 = vsel %vm891_vm2, %v1372_v30, -inf  ;;  %v753_v26 = vadd.f32 %v708_v31, %v2284_v60  ;;  %v1296_v34 = vpop.permute.xlu2 %1295 }
 0x1c1   : > { %v2533_v40 = vmax.f32 %v1395_v53, %v1396_v32  ;;  %v799_v61 = vpop.permute.xlu0 %798 }
 0x1c2   : > { %v842_v52 = vadd.f32 %v2466_v50, %v753_v26  ;;  %v843_v38 = vadd.f32 %v799_v61, %v754_v54  ;;  %v900_v26 = vrot.slane %v899_v18, 1 }
 0x1c4   : > { %v861_v51 = vadd.f32 %v2422_v35, %v842_v52  ;;  %v862_v2 = vadd.f32 %v2422_v35, %v843_v38 }
 0x1c5   : > { %820 = vrot.lane.b32.xlu1 %v791_v23, %s1923_s15 }
 0x1c6   : > { %v877_v60 = vmax.f32 %v861_v51, 0.0  ;;  %v878_v59 = vmax.f32 %v862_v2, 0.0  ;;  %v901_v2 = vmax.f32 %v899_v18, %v900_v26 }
 0x1c7   : > { %v1224_v49 = vpop.permute.xlu1 %1223 }
 0x1c8   : > { %v902_v11 = vsel %vm891_vm2, %v877_v60, -inf  ;;  %v903_v50 = vsel %vm893_vm3, %v878_v59, -inf  ;;  %v1259_v0 = vadd.f32 %v1224_v49, %v2308_v10  ;;  %v714_v5 = vpop.permute.xlu2 %713 }
 0x1c9   : > { %v904_v37 = vmax.f32 %v902_v11, %v903_v50  ;;  %v1314_v1 = vpop.permute.xlu0 %1313  ;;  %v756_v31 = vadd.f32 %v714_v5, %v2357_v44 }
 0x1ca   : > { %v1347_v47 = vadd.f32 %v1312_v12, %v1259_v0  ;;  %v1348_v24 = vadd.f32 %v1314_v1, %v1260_v43 }
 0x1cb   : > { %v905_v42 = vrot.slane %v904_v37, 4 }
 0x1cc   : > { %v1366_v16 = vadd.f32 %v2480_v55, %v1347_v47  ;;  %v1367_v21 = vadd.f32 %v2480_v55, %v1348_v24 }
 0x1cd   : > { %v906_v29 = vmax.f32 %v904_v37, %v905_v42 }
 0x1ce   : > { %v1382_v17 = vmax.f32 %v1366_v16, 0.0  ;;  %v1383_v7 = vmax.f32 %v1367_v21, 0.0 }
 0x1cf   : > { %v907_v30 = vrot.slane %v906_v29, 2  ;;  %v724_v54 = vpop.permute.xlu1 %723 }
 0x1d0   : > { %v1440_v10 = vsel %vm891_vm2, %v1382_v17, -inf  ;;  %v1441_v32 = vsel %vm893_vm3, %v1383_v7, -inf  ;;  %v761_v12 = vadd.f32 %v724_v54, %v2316_v15  ;;  %v803_v53 = vpop.permute.xlu2 %802 }
 0x1d1   : > { %v908_v36 = vmax.f32 %v906_v29, %v907_v30  ;;  %v2553_v61 = vmax.f32 %v1440_v10, %v1441_v32  ;;  %v845_v27 = vadd.f32 %v803_v53, %v756_v31  ;;  %v813_v52 = vpop.permute.xlu0 %812 }
 0x1d2   : > { %v2555_v38 = vadd.f32 %v813_v52, %v761_v12 }
 0x1d3   : > { %v909_v51 = vrot.slane %v908_v36, 1  ;;  %v864_v37 = vadd.f32 %v2422_v35, %v845_v27 }
 0x1d5   : > { %v910_v44 = vmax.f32 %v908_v36, %v909_v51  ;;  %v880_v18 = vmax.f32 %v864_v37, 0.0 }
 0x1d7   : > { %v1469_v23 = vsel %vm1468_vm4, %v910_v44, %v901_v2  ;;  %v1210_v56 = vpop.permute.xlu1 %1209 }
 0x1d8   : > { %v2558_v60 = vpop.permute.xlu2 %729  ;;  %v1252_v15 = vadd.f32 %v1210_v56, %v2347_v33 }
 0x1d9   : > { %v1298_v59 = vpop.permute.xlu0 %1297 }
 0x1da   : > { %v1340_v49 = vadd.f32 %v1298_v59, %v1252_v15 }
 0x1dc   : > { %v1359_v0 = vadd.f32 %v2480_v55, %v1340_v49 }
 0x1de   : > { %v1375_v1 = vmax.f32 %v1359_v0, 0.0 }
 0x1df   : > { %v712_v43 = vpop.permute.xlu1 %711 }
 0x1e0   : > { %v2561_v11 = vpop.permute.xlu2 %1315  ;;  %v755_v47 = vadd.f32 %v712_v43, %v2340_v28  ;;  %v1405_v29 = vsel %vm893_vm3, %v1375_v1, -inf  ;;  %v912_v28 = vsel %vm893_vm3, %v880_v18, -inf  ;;  %v932_v1 = vrot.slane %v2519_v39, 4 }
 0x1e1   : > { %v1208_v50 = vpop.permute.xlu0 %1207 }
 0x1e2   : > { %v1251_v5 = vadd.f32 %v1208_v50, %v2330_v22 }
 0x1e4   : > { %v1339_v6 = vadd.f32 %v1296_v34, %v1251_v5 }
 0x1e6   : > { %v1358_v24 = vadd.f32 %v2480_v55, %v1339_v6 }
 0x1e7   : > { %v801_v42 = vpop.permute.xlu1 %800 }
 0x1e8   : > { %v1374_v16 = vmax.f32 %v1358_v24, 0.0  ;;  %v844_v33 = vadd.f32 %v801_v42, %v755_v47  ;;  %v1212_v7 = vpop.permute.xlu2 %1211 }
 0x1e9   : > { %v2568_v21 = vpop.permute.xlu0 %1317 }
 0x1ea   : > { %v1404_v17 = vsel %vm891_vm2, %v1374_v16, -inf  ;;  %v863_v22 = vadd.f32 %v2422_v35, %v844_v33 }
 0x1eb   : > { %v2573_v34 = vmax.f32 %v1404_v17, %v1405_v29 }
 0x1ec   : > { %v879_v30 = vmax.f32 %v863_v22, 0.0 }
 0x1ee   : > { %v911_v31 = vsel %vm891_vm2, %v879_v30, -inf }
 0x1ef   : > { %v913_v54 = vmax.f32 %v911_v31, %v912_v28  ;;  %v1230_v10 = vpop.permute.xlu1 %1229  ;;  %v1253_v31 = vadd.f32 %v1212_v7, %v2384_v3 }
 0x1f0   : > { %v1300_v36 = vpop.permute.xlu2 %1299 }
 0x1f1   : > { %v914_v32 = vrot.slane %v913_v54, 4  ;;  %v1228_v12 = vpop.permute.xlu0 %1227 }
 0x1f3   : > { %v915_v53 = vmax.f32 %v913_v54, %v914_v32  ;;  %v1261_v54 = vadd.f32 %v1228_v12, %v2364_v48 }
 0x1f5   : > { %v916_v26 = vrot.slane %v915_v53, 2 }
 0x1f7   : > { %v917_v27 = vmax.f32 %v915_v53, %v916_v26  ;;  %v2577_v52 = vpop.permute.xlu1 %727  ;;  %v1262_v26 = vadd.f32 %v1230_v10, %v2377_v62 }
 0x1f8   : > { %v718_v59 = vpop.permute.xlu2 %717 }
 0x1f9   : > { %v918_v51 = vrot.slane %v917_v27, 1  ;;  %v1214_v2 = vpop.permute.xlu0 %1213  ;;  %v758_v43 = vadd.f32 %v718_v59, %v2412_v25  ;;  %v1350_v48 = vadd.f32 %v2568_v21, %v1262_v26 }
 0x1fa   : > { %v1254_v30 = vadd.f32 %v1214_v2, %v2400_v14 }
 0x1fb   : > { %v919_v44 = vmax.f32 %v917_v27, %v918_v51  ;;  %v1341_v27 = vadd.f32 %v1300_v36, %v1253_v31 }
 0x1fd   : > { %v1471_v56 = vsel %vm1470_vm5, %v919_v44, %v1469_v23  ;;  %v933_v23 = vmax.f32 %v2519_v39, %v932_v1  ;;  %v1360_v12 = vadd.f32 %v2480_v55, %v1341_v27 }
 0x1ff   : > { %v807_v15 = vpop.permute.xlu1 %806  ;;  %v934_v22 = vrot.slane %v933_v23, 2 }
 0x200   : > { %v847_v50 = vadd.f32 %v807_v15, %v758_v43  ;;  %v2586_v16 = vpop.permute.xlu2 %733  ;;  %v1349_v43 = vadd.f32 %v2561_v11, %v1261_v54 }
 0x201   : > { %v1302_v49 = vpop.permute.xlu0 %1301  ;;  %v935_v53 = vmax.f32 %v933_v23, %v934_v22  ;;  %v763_v22 = vadd.f32 %v2577_v52, %v2372_v57 }
 0x202   : > { %v866_v5 = vadd.f32 %v2422_v35, %v847_v50  ;;  %v1342_v39 = vadd.f32 %v1302_v49, %v1254_v30  ;;  %v1368_v62 = vadd.f32 %v2480_v55, %v1349_v43 }
 0x203   : > { %v936_v3 = vrot.slane %v935_v53, 1 }
 0x204   : > { %v882_v24 = vmax.f32 %v866_v5, 0.0  ;;  %v1361_v14 = vadd.f32 %v2480_v55, %v1342_v39  ;;  %v1369_v5 = vadd.f32 %v2480_v55, %v1350_v48  ;;  %v1384_v23 = vmax.f32 %v1368_v62, 0.0 }
 0x206   : > { %v921_v25 = vsel %vm893_vm3, %v882_v24, -inf  ;;  %v1377_v10 = vmax.f32 %v1361_v14, 0.0  ;;  %v1434_v24 = vrot.slane %v2506_v58, 4  ;;  %v1449_v54 = vsel %vm891_vm2, %v1384_v23, -inf }
 0x207   : > { %v716_v0 = vpop.permute.xlu1 %715 }
 0x208   : > { %v757_v6 = vadd.f32 %v716_v0, %v2395_v9  ;;  %v1200_v59 = vpop.permute.xlu2 %1199 }
 0x209   : > { %v805_v37 = vpop.permute.xlu0 %804 }
 0x20a   : > { %v846_v47 = vadd.f32 %v805_v37, %v757_v6  ;;  %v1376_v6 = vmax.f32 %v1360_v12, 0.0 }
 0x20c   : > { %v865_v42 = vadd.f32 %v2422_v35, %v846_v47 }
 0x20e   : > { %v881_v33 = vmax.f32 %v865_v42, 0.0  ;;  %v764_v42 = vadd.f32 %v2558_v60, %v2386_v4  ;;  %v1355_v4 = vadd.f32 %v2480_v55, %v2404_v19  ;;  %v1435_v60 = vmax.f32 %v2506_v58, %v1434_v24 }
 0x20f   : > { %v2588_v18 = vpop.permute.xlu1 %731  ;;  %v1407_v19 = vrot.slane %v2573_v34, 4 }
 0x210   : > { %v920_v29 = vsel %vm891_vm2, %v881_v33, -inf  ;;  %v1371_v14 = vmax.f32 %v1355_v4, 0.0 }
 0x211   : > { %v922_v17 = vmax.f32 %v920_v29, %v921_v25  ;;  %v1216_v9 = vpop.permute.xlu0 %1215  ;;  %v817_v25 = vpop.permute.xlu2 %816  ;;  %v1408_v12 = vmax.f32 %v2573_v34, %v1407_v19 }
 0x212   : > { %v1255_v15 = vadd.f32 %v1216_v9, %v2427_v46  ;;  %v937_v46 = vmax.f32 %v935_v53, %v936_v3  ;;  %v1385_v9 = vmax.f32 %v1369_v5, 0.0  ;;  %v852_v39 = vadd.f32 %v817_v25, %v763_v22 }
 0x213   : > { %v923_v28 = vrot.slane %v922_v17, 4  ;;  %v1247_v53 = vadd.f32 %v1200_v59, %v2471_v63  ;;  %v1409_v24 = vrot.slane %v1408_v12, 2 }
 0x214   : > { %v1450_v57 = vsel %vm893_vm3, %v1385_v9, -inf }
 0x215   : > { %v924_v32 = vmax.f32 %v922_v17, %v923_v28  ;;  %v1451_v58 = vmax.f32 %v1449_v54, %v1450_v57 }
 0x217   : > { %v925_v51 = vrot.slane %v924_v32, 2  ;;  %v1218_v44 = vpop.permute.xlu1 %1217 }
 0x218   : > { %v1256_v11 = vadd.f32 %v1218_v44, %v2447_v13  ;;  %v1414_v13 = vsel %vm893_vm3, %v1377_v10, -inf }
 0x219   : > { %v926_v2 = vmax.f32 %v924_v32, %v925_v51  ;;  %v1304_v50 = vpop.permute.xlu0 %1303  ;;  %v1398_v32 = vrot.slane %v2533_v40, 4 }
 0x21a   : > { %v1343_v7 = vadd.f32 %v1304_v50, %v1255_v15  ;;  %v1436_v50 = vrot.slane %v1435_v60, 2 }
 0x21b   : > { %v927_v49 = vrot.slane %v926_v2, 1  ;;  %v1399_v63 = vmax.f32 %v2533_v40, %v1398_v32  ;;  %v1387_v40 = vsel %vm893_vm3, %v1371_v14, -inf  ;;  %v765_v32 = vadd.f32 %v2588_v18, %v2425_v45 }
 0x21c   : > { %v1362_v0 = vadd.f32 %v2480_v55, %v1343_v7  ;;  %v1443_v7 = vrot.slane %v2553_v61, 4 }
 0x21d   : > { %v928_v36 = vmax.f32 %v926_v2, %v927_v49  ;;  %v871_v2 = vadd.f32 %v2422_v35, %v852_v39  ;;  %v1452_v49 = vrot.slane %v1451_v58, 4  ;;  %v1400_v5 = vrot.slane %v1399_v63, 2 }
 0x21e   : > { %v1378_v29 = vmax.f32 %v1362_v0, 0.0  ;;  %v1437_v0 = vmax.f32 %v1435_v60, %v1436_v50  ;;  %v1444_v34 = vmax.f32 %v2553_v61, %v1443_v7 }
 0x21f   : > { %v1306_v37 = vpop.permute.xlu1 %1305  ;;  %v1473_v21 = vsel %vm1472_vm6, %v928_v36, %v1471_v56  ;;  %v1413_v56 = vsel %vm891_vm2, %v1376_v6, -inf  ;;  %v762_v36 = vadd.f32 %v2501_v41, %v2327_v20 }
 0x220   : > { %v1344_v1 = vadd.f32 %v1306_v37, %v1256_v11  ;;  %v2607_v47 = vsel %vm1474_vm7, %v937_v46, %v1473_v21  ;;  %v1415_v28 = vmax.f32 %v1413_v56, %v1414_v13  ;;  %v1422_v26 = vsel %vm891_vm2, %v1378_v29, -inf }
 0x221   : > { %v819_v33 = vpop.permute.xlu0 %818  ;;  %v869_v46 = vadd.f32 %v2422_v35, %v2555_v38  ;;  %v887_v11 = vmax.f32 %v871_v2, 0.0  ;;  %v766_v21 = vadd.f32 %v2586_v16, %v2441_v8  ;;  %v1453_v38 = vmax.f32 %v1451_v58, %v1452_v49 }
 0x222   : > { %v1363_v17 = vadd.f32 %v2480_v55, %v1344_v1  ;;  %v853_v30 = vadd.f32 %v819_v33, %v764_v42  ;;  %v1416_v15 = vrot.slane %v1415_v28, 4  ;;  %v1401_v56 = vmax.f32 %v1399_v63, %v1400_v5 }
 0x223   : > { %v885_v13 = vmax.f32 %v869_v46, 0.0  ;;  %v947_v33 = vsel %vm891_vm2, %v887_v11, -inf  ;;  %v1445_v22 = vrot.slane %v1444_v34, 2  ;;  %v1410_v16 = vmax.f32 %v1408_v12, %v1409_v24 }
 0x224   : > { %v1379_v31 = vmax.f32 %v1363_v17, 0.0  ;;  %v872_v51 = vadd.f32 %v2422_v35, %v853_v30  ;;  %v1417_v62 = vmax.f32 %v1415_v28, %v1416_v15  ;;  %v1438_v39 = vrot.slane %v1437_v0, 1 }
 0x225   : > { %v938_v4 = vsel %vm891_vm2, %v885_v13, -inf  ;;  %v1402_v57 = vrot.slane %v1401_v56, 1  ;;  %v1411_v58 = vrot.slane %v1410_v16, 1 }
 0x226   : > { %v1423_v27 = vsel %vm893_vm3, %v1379_v31, -inf  ;;  %v888_v48 = vmax.f32 %v872_v51, 0.0  ;;  %v1418_v42 = vrot.slane %v1417_v62, 2  ;;  %v1454_v31 = vrot.slane %v1453_v38, 2 }
 0x227   : > { %v1424_v52 = vmax.f32 %v1422_v26, %v1423_v27  ;;  %v1288_v44 = vpop.permute.xlu1 %1287  ;;  %v1439_v18 = vmax.f32 %v1437_v0, %v1438_v39  ;;  %v1403_v7 = vmax.f32 %v1401_v56, %v1402_v57 }
 0x228   : > { %v1335_v43 = vadd.f32 %v1288_v44, %v1247_v53  ;;  %v948_v1 = vsel %vm893_vm3, %v888_v48, -inf  ;;  %v1419_v30 = vmax.f32 %v1417_v62, %v1418_v42  ;;  %v1455_v14 = vmax.f32 %v1453_v38, %v1454_v31  ;;  %v1458_v31 = vld [vmem:[%s458_s22] sm:$0xff] }
 0x229   : > { %v1425_v59 = vrot.slane %v1424_v52, 4  ;;  %v949_v9 = vmax.f32 %v947_v33, %v948_v1  ;;  %v1412_v62 = vmax.f32 %v1410_v16, %v1411_v58 }
 0x22a   : > { %v1354_v3 = vadd.f32 %v2480_v55, %v1335_v43  ;;  %v823_v55 = vpop.permute.xlu2 %822  ;;  %v1420_v15 = vrot.slane %v1419_v30, 1  ;;  %v1456_v46 = vrot.slane %v1455_v14, 1 }
 0x22b   : > { %v1426_v6 = vmax.f32 %v1424_v52, %v1425_v59  ;;  %v855_v25 = vadd.f32 %v823_v55, %v766_v21  ;;  %v950_v26 = vrot.slane %v949_v9, 4  ;;  %v1446_v52 = vmax.f32 %v1444_v34, %v1445_v22 }
 0x22c   : > { %v1370_v10 = vmax.f32 %v1354_v3, 0.0  ;;  %v1457_v38 = vmax.f32 %v1455_v14, %v1456_v46 }
 0x22d   : > { %v1427_v17 = vrot.slane %v1426_v6, 2  ;;  %v874_v60 = vadd.f32 %v2422_v35, %v855_v25  ;;  %v951_v3 = vmax.f32 %v949_v9, %v950_v26  ;;  %v1447_v49 = vrot.slane %v1446_v52, 1 }
 0x22e   : > { %v1386_v37 = vsel %vm891_vm2, %v1370_v10, -inf  ;;  %v1421_v10 = vmax.f32 %v1419_v30, %v1420_v15 }
 0x22f   : > { %v1388_v20 = vmax.f32 %v1386_v37, %v1387_v40  ;;  %v815_v41 = vpop.permute.xlu1 %814  ;;  %v1428_v53 = vmax.f32 %v1426_v6, %v1427_v17  ;;  %v890_v2 = vmax.f32 %v874_v60, 0.0  ;;  %v952_v6 = vrot.slane %v951_v3, 2 }
 0x230   : > { %v851_v23 = vadd.f32 %v815_v41, %v762_v36  ;;  %v1448_v1 = vmax.f32 %v1446_v52, %v1447_v49 }
 0x231   : > { %v1389_v29 = vrot.slane %v1388_v20, 4  ;;  %v1429_v59 = vrot.slane %v1428_v53, 1  ;;  %v957_v11 = vsel %vm893_vm3, %v890_v2, -inf }
 0x232   : > { %v870_v61 = vadd.f32 %v2422_v35, %v851_v23  ;;  %v953_v23 = vmax.f32 %v951_v3, %v952_v6 }
 0x233   : > { %v1390_v8 = vmax.f32 %v1388_v20, %v1389_v29  ;;  %v1430_v55 = vmax.f32 %v1428_v53, %v1429_v59  ;;  %v1459_v59 = vld [vmem:[%s462_s26] sm:$0xff] }
 0x234   : > { %v886_v28 = vmax.f32 %v870_v61, 0.0  ;;  %v954_v61 = vrot.slane %v953_v23, 1 }
 0x235   : > { %v1391_v54 = vrot.slane %v1390_v8, 2 }
 0x236   : > { %v939_v27 = vsel %vm893_vm3, %v886_v28, -inf }
 0x237   : > { %v1392_v51 = vmax.f32 %v1390_v8, %v1391_v54  ;;  %v940_v44 = vmax.f32 %v938_v4, %v939_v27  ;;  %v821_v19 = vpop.permute.xlu1 %820  ;;  %v955_v8 = vmax.f32 %v953_v23, %v954_v61  ;;  %v1607_v23 = vld [vmem:[%s2726_s8 + $0x10] sm:$0xff] }
 0x238   : > { %v854_v43 = vadd.f32 %v821_v19, %v765_v32 }
 0x239   : > { %v1393_v50 = vrot.slane %v1392_v51, 1  ;;  %v941_v63 = vrot.slane %v940_v44, 4 }
 0x23a   : > { %v873_v45 = vadd.f32 %v2422_v35, %v854_v43 }
 0x23b   : > { %v1394_v48 = vmax.f32 %v1392_v51, %v1393_v50  ;;  %v942_v12 = vmax.f32 %v940_v44, %v941_v63 }
 0x23c   : > { %v889_v36 = vmax.f32 %v873_v45, 0.0 }
 0x23d   : > { %v943_v40 = vrot.slane %v942_v12, 2  ;;  %v1490_v5 = vsel %vm1468_vm4, %v1403_v7, %v1394_v48 }
 0x23e   : > { %v956_v37 = vsel %vm891_vm2, %v889_v36, -inf  ;;  %v1491_v35 = vsel %vm1470_vm5, %v1412_v62, %v1490_v5 }
 0x23f   : > { %v944_v0 = vmax.f32 %v942_v12, %v943_v40  ;;  %v958_v34 = vmax.f32 %v956_v37, %v957_v11  ;;  %v1492_v21 = vsel %vm1472_vm6, %v1421_v10, %v1491_v35 }
 0x240   : > { %v1493_v20 = vsel %vm1474_vm7, %v1430_v55, %v1492_v21 }
 0x241   : > { %v945_v41 = vrot.slane %v944_v0, 1  ;;  %v959_v24 = vrot.slane %v958_v34, 4  ;;  %v1494_v42 = vsel %vm1476_vm8, %v1439_v18, %v1493_v20  ;;  %v1612_v20 = vld [vmem:[%s2726_s8 + $0x38] sm:$0xff] }
 0x242   : > { %v1495_v13 = vsel %vm1478_vm9, %v1448_v1, %v1494_v42  ;;  %v1608_v42 = vld [vmem:[%s2726_s8 + $0x18] sm:$0xff] }
 0x243   : > { %v946_v33 = vmax.f32 %v944_v0, %v945_v41  ;;  %v960_v25 = vmax.f32 %v958_v34, %v959_v24  ;;  %v1496_v29 = vsel %vm1480_vm10, %v1457_v38, %v1495_v13  ;;  %v1611_v41 = vld [vmem:[%s2726_s8 + $0x30] sm:$0xff]  ;;  %v1610_v24 = vld [vmem:[%s2726_s8 + $0x28] sm:$0xff]  ;;  %v1609_v38 = vld [vmem:[%s2726_s8 + $0x20] sm:$0xff] }
 0x244   : > { %1826 = vmatpush.xpose.msk.msrb.mxu2 %vm891_vm2, %v1496_v29  ;;  %1555 = vmatpush.msrb.mxu3 %v1496_v29  ;;  %v1606_v13 = vld [vmem:[%s2726_s8 + $0x8] sm:$0xff] }
 0x245   : > { %v961_v17 = vrot.slane %v960_v25, 2  ;;  %v1477_v9 = vsel %vm1476_vm8, %v946_v33, %v2607_v47  ;;  %v1605_v33 = vld [vmem:[%s2726_s8] sm:$0xff] }
 0x246   : > { %v1479_v30 = vsel %vm1478_vm9, %v955_v8, %v1477_v9  ;;  %1626 = vmatpush.msra.mxu3 %v1612_v20 }
 0x247   : > { %v962_v56 = vmax.f32 %v960_v25, %v961_v17 }
 0x248   : > { %1627 = vmatpush.msra.mxu3 %v1611_v41 }
 0x249   : > { %v963_v22 = vrot.slane %v962_v56, 1 }
 0x24a   : > { %1628 = vmatpush.msra.mxu3 %v1610_v24 }
 0x24b   : > { %v964_v16 = vmax.f32 %v962_v56, %v963_v22 }
 0x24c   : > { %1629 = vmatpush.msra.mxu3 %v1609_v38 }
 0x24d   : > { %v1481_v28 = vsel %vm1480_vm10, %v964_v16, %v1479_v30 }
 0x24e   : > { %1827 = vmatmul.msk.f32.vlgmr.msrb.gmra.mxu2 %vm891_vm2, %v1481_v28  ;;  %1630 = vmatpush.msra.mxu3 %v1608_v42 }
 0x250   : > { %1631 = vmatpush.msra.mxu3 %v1607_v23 }
 0x252   : > { %1632 = vmatpush.msra.mxu3 %v1606_v13 }
 0x254   : > { %1633 = vmatpush.msra.mxu3 %v1605_v33 }
 0x2d1   : > { %v1518_v4 = vpop.f32.mrf.mxu2 }
 0x2d2   : > { %v1521_v60 = vmul.f32 0.17677669, %v1518_v4 }
 0x2d4   : > { %v1522_v47 = vadd.f32 %v1521_v60, %v1458_v31  ;;  %v1613_v31 = vld [vmem:[%s2727_s9] sm:$0x1] }
 0x2d6   : > { %v1524_v54 = vsel %vm1523_vm11, %v1522_v47, -inf }
 0x2d7   : > { %1525 = vmax.xlane.f32.xlu0 %v1524_v54  ;;  %v1568_v39 = vrot.slane %v1524_v54, 4 }
 0x2d9   : > { %v1569_v32 = vmax.f32 %v1524_v54, %v1568_v39 }
 0x2db   : > { %v1570_v53 = vrot.slane %v1569_v32, 2 }
 0x2dd   : > { %v1571_v26 = vmax.f32 %v1569_v32, %v1570_v53  ;;  %v1645_v53 = vld [vmem:[#allocation2] sm:$0x1] }
 0x2df   : > { %v1572_v27 = vrot.slane %v1571_v26, 1 }
 0x2e1   : > { %v1573_v57 = vmax.f32 %v1571_v26, %v1572_v27 }
 0x2e3   : > { %v1574_v52 = vsub.f32 %v1522_v47, %v1573_v57 }
 0x2e5   : > { %v1575_v51 = vmul.f32 1.442695, %v1574_v52 }
 0x2e7   : > { %1901 = vpow2.f32 %v1575_v51 }
 0x2ed   : > { %v1902_v44 = vpop.eup %1901 }
 0x2ee   : > { %v1577_v19 = vsel %vm1523_vm11, %v1902_v44, 0.0 }
 0x2ef   : > { %v1578_v58 = vrot.slane %v1577_v19, 4 }
 0x2f1   : > { %v1579_v15 = vadd.f32 %v1578_v58, %v1577_v19 }
 0x2f3   : > { %v1580_v43 = vrot.slane %v1579_v15, 2 }
 0x2f5   : > { %v1581_v14 = vadd.f32 %v1580_v43, %v1579_v15 }
 0x2f7   : > { %v1582_v2 = vrot.slane %v1581_v14, 1 }
 0x2f9   : > { %v1583_v50 = vadd.f32 %v1582_v2, %v1581_v14 }
 0x2fb   : > { %1903 = vrcp.f32 %v1583_v50 }
 0x301   : > { %v1904_v63 = vpop.eup %1903 }
 0x302   : > { %v1585_v3 = vmul.f32 %v1904_v63, %v1902_v44 }
 0x304   : > { %v1586_v45 = vmul.f32 %v1585_v3, %v1459_v59 }
 0x306   : > { %v1587_v18 = vsel %vm1523_vm11, %v1586_v45, 0.0 }
 0x307   : > { %1588 = vadd.xlane.f32.xlu2 %v1587_v18 }
 0x34a   : > { %v1526_v7 = vpop.xlane.xlu0 %1525 }
 0x34b   : > { %v1527_v48 = vsub.f32 %v1522_v47, %v1526_v7  ;;  %v1639_v47 = vld [vmem:[%s2728_s10] sm:$0x1] }
 0x34d   : > { %v1528_v12 = vmul.f32 1.442695, %v1527_v48 }
 0x34f   : > { %1905 = vpow2.f32 %v1528_v12 }
 0x355   : > { %v1906_v49 = vpop.eup %1905 }
 0x356   : > { %v1530_v62 = vsel %vm1523_vm11, %v1906_v49, 0.0 }
 0x357   : > { %1531 = vadd.xlane.f32.xlu1 %v1530_v62 }
 0x37a   : > { %v1589_v10 = vpop.xlane.xlu2 %1588 }
 0x37b   : > { %v1591_v36 = vmul.f32 %v1589_v10, %v1481_v28 }
 0x37d   : > { %v1592_v46 = vsel %vm891_vm2, %v1591_v36, 0.0 }
 0x37e   : > { %v1593_v11 = vrot.slane %v1592_v46, 4 }
 0x380   : > { %v1594_v40 = vadd.f32 %v1593_v11, %v1592_v46 }
 0x382   : > { %v1595_v5 = vrot.slane %v1594_v40, 2 }
 0x384   : > { %v1596_v55 = vadd.f32 %v1595_v5, %v1594_v40 }
 0x386   : > { %v1597_v6 = vrot.slane %v1596_v55, 1 }
 0x388   : > { %v1598_v37 = vadd.f32 %v1597_v6, %v1596_v55 }
 0x38a   : > { %v1599_v35 = vmul.f32 0.125, %v1598_v37 }
 0x38c   : > { %1601 = vrot.lane.b32.xlu2 %v1599_v35, %s1925_s28 }
 0x3ca   : > { %v1532_v0 = vpop.xlane.xlu1 %1531 }
 0x3cb   : > { %1907 = vrcp.f32 %v1532_v0 }
 0x3d1   : > { %v1908_v34 = vpop.eup %1907 }
 0x3d2   : > { %v1534_v21 = vmul.f32 %v1908_v34, %v1906_v49 }
 0x3d4   : > { %v1535_v1 = vmul.f32 %v1534_v21, %v1459_v59 }
 0x3d6   : > { %1828 = vmatmul.msk.f32.vlgmr.msrb.gmra.mxu3 %vm1523_vm11, %v1535_v1 }
 0x3e6   : > { %v1602_v30 = vpop.permute.xlu2 %1601 }
 0x459   : > { %v1557_v25 = vpop.f32.mrf.mxu3 }
 0x45a   : > { %v1560_v29 = vsel %vm891_vm2, %v1557_v25, 0.0 }
 0x45b   : > { %v1561_v17 = vrot.slane %v1560_v29, 4 }
 0x45d   : > { %v1562_v9 = vadd.f32 %v1561_v17, %v1560_v29 }
 0x45f   : > { %v1563_v61 = vrot.slane %v1562_v9, 2 }
 0x461   : > { %v1564_v56 = vadd.f32 %v1563_v61, %v1562_v9 }
 0x463   : > { %v1565_v22 = vrot.slane %v1564_v56, 1 }
 0x465   : > { %v1566_v8 = vadd.f32 %v1565_v22, %v1564_v56 }
 0x467   : > { %v1567_v16 = vmul.f32 0.125, %v1566_v8 }
 0x469   : > { %v1604_v28 = vsel %vm891_vm2, %v1567_v16, %v1602_v30 }
 0x46a   : > { %1829 = vmatmul.msk.f32.vlgmr.msra.gmra.mxu3 %vm1614_vm12, %v1604_v28 }
 0x4ed   : > { %v1635_v4 = vpop.f32.mrf.mxu3 }
 0x4ee   : > { %v1636_v60 = vadd.f32 %v1635_v4, %v1613_v31 }
 0x4f0   : > { %v1638_v54 = vmax.f32 %v1636_v60, 0.0 }
 0x4f2   : > { %v1640_v39 = vmul.f32 %v1639_v47, %v1638_v54 }
 0x4f4   : > { %v1642_v32 = vsel %vm1641_vm13, %v1640_v39, 0.0 }
 0x4f5   : > { %1643 = vadd.xlane.f32.xlu0 %v1642_v32 }
 0x568   : > { %v1644_v26 = vpop.xlane.xlu0 %1643 }
 0x569   : > { %v1646_v27 = vadd.f32 %v1645_v53, %v1644_v26 }
 0x56b   : > { %v1830_v57 = vmul.f32 -1.442695, %v1646_v27 }
 0x56d   : > { %1909 = vpow2.f32 %v1830_v57 }
 0x573   : > { %v1910_v52 = vpop.eup %1909 }
 0x574   : > { %v1650_v51 = vadd.f32 1.0, %v1910_v52 }
 0x576   : > { %1911 = vrcp.f32 %v1650_v51  ;;  %v1662_v15 = vand.u32 2147483648, %v1650_v51  ;;  %v1660_v14 = vand.u32 2147483647, %v1650_v51  ;;  %vm1656_vm15 = vweird.f32 %v1650_v51 }
 0x578   : > { %v1663_v50 = vor.u32 1.1754944e-38, %v1662_v15  ;;  %vm1661_vm2 = vcmp.eq.f32.partialorder %v1660_v14, 8.507059e+37 }
 0x57c   : > { %v1912_v44 = vpop.eup %1911 }
 0x57d   : > { %v1652_v19 = vmul.f32 %v1912_v44, %v1650_v51  ;;  %vm1657_vm14 = vweird.f32 %v1912_v44 }
 0x57e   : > { %vm1658_vm1 = vmor %vm1656_vm15, %vm1657_vm14 }
 0x57f   : > { %v1653_v58 = vsub.f32 1.0, %v1652_v19 }
 0x581   : > { %v1654_v43 = vmul.f32 %v1912_v44, %v1653_v58 }
 0x583   : > { %v1655_v2 = vadd.f32 %v1912_v44, %v1654_v43 }
 0x585   : > { %v1659_v63 = vsel %vm1658_vm1, %v1912_v44, %v1655_v2 }
 0x586   : > { %v1664_v59 = vsel %vm1661_vm2, %v1663_v50, %v1659_v63 }
 0x587   : > { %1667 = vst.msk [vmem:[%s465_s16] sm:$0x1] %vm1666_vm0, %v1664_v59 }
 0x588 PF: > { %s24_s23 = sadd.s32 1, %s1919_s23  }
 0x589   : > { %p21_p4 = scmp.ge.s32.totalorder %s24_s23, 4  }
 0x58b   :  { %23 = sbr.rel (!%p21_p4) target bundleno = 3 (0x3), region = 107 }

</bundles_post_ra>
